<compile_context>
chip_gen: v7x
topology: tpu7x:2x2x1
jax: 0.10.0
libtpu: 0.0.40
codegen_flags: <defaults>
</compile_context>

<pallas_src>
import jax
import jax.numpy as jnp
from jax.experimental import pallas as pl
from jax.experimental.pallas import tpu as pltpu

LN_EPS = 1e-5


def _round_up(x, m):
    return (x + m - 1) // m * m


def _pick_batch_block(batch, max_block=8):
    # Largest block (<= max_block) dividing `batch` that keeps >= 2 grid steps,
    # so the "parallel" batch axis can be sharded across v7x's two TensorCores.
    for bt in range(min(batch, max_block), 0, -1):
        if batch % bt == 0 and batch // bt >= 2:
            return bt
    return 1


def _vmem_limit_bytes(*, cin, c, c2, k, s, bt):
    bts = bt * s
    est = (
        2 * 2 * cin * bts * 2        # x, z blocks (bf16), double-buffered
        + 2 * c * bts * 4            # f32 residual, double-buffered
        + 2 * c * bts * 4            # output, double-buffered
        + 2 * (4 * c2 + 1) * s * 4   # LN gamma/beta/mask
        + 2 * 2 * c2 * (k + 1) * 2   # conv weights (+ bias column)
        + 2 * c2 * bts * 4           # xc / zc conv-result scratch
        + 2 * (k + 1) * bts * 2      # im2col slab temporaries (bf16)
    )
    est = int(est * 3)               # headroom for Mosaic temporaries
    return max(8 * 1024 * 1024, min(est, 60 * 1024 * 1024))


# ---------------------------------------------------------------------------
# Kernel factory: one grid step == `batch_block` samples, side by side on lanes.
# ---------------------------------------------------------------------------
def _make_ghu_kernel(*, num_hidden, height, width, width_pad, s_blk,
                     filter_size, batch_block):
    C = num_hidden
    C2 = 2 * num_hidden
    fs = filter_size
    Wtot = batch_block * s_blk
    tap_offsets = [kh * width_pad + kw for kh in range(fs) for kw in range(fs)]
    inv_n = 1.0 / float(C2 * height * width)      # LN count over valid elements

    def kernel(x_ref, z_ref, zres_ref, w_ref, c_ref, out_ref, xc_ref, zc_ref):
        # Grid-constant operands (constant index maps -> fetched once).
        wx = w_ref[0]                              # (C2, K+1) bf16, bias folded
        wz = w_ref[1]
        gx = c_ref[0 * C2:1 * C2, :]               # (C2, S) f32
        btx = c_ref[1 * C2:2 * C2, :]
        gz = c_ref[2 * C2:3 * C2, :]
        btz = c_ref[3 * C2:4 * C2, :]
        msk = c_ref[4 * C2:4 * C2 + 1, :]          # (1, S) valid-column mask

        ones_row = jnp.ones((1, Wtot), jnp.bfloat16)   # hoisted, reused twice

        def shift_left(a, o):
            # out[:, j] = a[:, j + o].  The trailing o lanes are don't-care:
            # they only ever feed masked / discarded junk output columns.
            if o == 0:
                return a
            tail = jnp.zeros((a.shape[0], o), jnp.bfloat16)
            return jnp.concatenate([a[:, o:], tail], axis=1)

        def build_slab(a):
            # (K+1, bt*S) bf16 im2col slab: fs*fs shifted copies, tap-major /
            # cin-minor (matches the flattened weights), plus a ones row so
            # the conv bias rides the matmul.
            taps = [shift_left(a, o) for o in tap_offsets]
            return jnp.concatenate(taps + [ones_row], axis=0)

        # One wide MXU dot per conv per grid step (bf16 in, f32 accumulate),
        # parked in VMEM scratch for the per-sample epilogue.
        xc_ref[...] = jnp.dot(wx, build_slab(x_ref[...]),
                              preferred_element_type=jnp.float32)
        zc_ref[...] = jnp.dot(wz, build_slab(z_ref[...]),
                              preferred_element_type=jnp.float32)

        def layer_norm(y, gamma, beta):
            # Single-pass masked LayerNorm over the valid (C2, H, W) elements.
            ym = y * msk
            s1 = jnp.sum(ym, keepdims=True)        # (1, 1)
            s2 = jnp.sum(ym * ym, keepdims=True)
            mu = s1 * inv_n
            var = s2 * inv_n - mu * mu
            inv = jax.lax.rsqrt(var + LN_EPS)
            # gamma/beta are zero on junk columns, so junk stays bounded.
            return (y - mu) * inv * gamma + beta

        def body(b, carry):
            col = pl.multiple_of(b * s_blk, 128)   # 128-aligned lane offset
            xn = layer_norm(xc_ref[:, pl.ds(col, s_blk)], gx, btx)
            zn = layer_norm(zc_ref[:, pl.ds(col, s_blk)], gz, btz)
            # p/s split is a sublane-aligned row split in this layout.
            p_t = jnp.tanh(xn[:C, :] + zn[:C, :])
            s_t = jax.nn.sigmoid(xn[C:, :] + zn[C:, :])
            z_res = zres_ref[:, pl.ds(col, s_blk)]                 # f32 residual
            out_ref[:, pl.ds(col, s_blk)] = s_t * p_t + (1.0 - s_t) * z_res
            return carry

        jax.lax.fori_loop(0, batch_block, body, 0)

    return kernel


# ---------------------------------------------------------------------------
# Wrapper: layout glue + pallas_call.
# ---------------------------------------------------------------------------
def ghu_forward(x_t, z_t, params, *, num_hidden, width, filter_size):
    """x_t, z_t: (B, Cin, H, W) NCHW float32. Returns z_new in the same layout."""
    B, Cin, H, W = x_t.shape
    assert Cin == num_hidden and H == width and W == width
    fs = filter_size
    p = fs // 2
    Hp, Wp = H + 2 * p, W + 2 * p
    C = num_hidden
    C2 = 2 * num_hidden
    K = fs * fs * Cin
    Lin = Hp * Wp                    # flattened zero-padded input length
    Lout = H * Wp                    # width-padded flat output domain
    # Per-sample lane stride: 128-aligned and large enough that every tap slice
    # of every valid output column stays inside the sample's own lane block.
    S = _round_up(Lin + fs - 1, 128)
    f32 = jnp.float32

    bt = _pick_batch_block(B)
    Wtot = bt * S

    # ---- activations: (B, Cin, H, W) -> (Cin, B*S), samples side by side ----
    def widen(a):
        ap = jnp.pad(a.astype(f32), ((0, 0), (0, 0), (p, p), (p, p)))
        flat = ap.reshape(B, Cin, Lin)
        flat = jnp.pad(flat, ((0, 0), (0, 0), (0, S - Lin)))
        return flat.transpose(1, 0, 2).reshape(Cin, B * S)

    xw = widen(x_t).astype(jnp.bfloat16)          # bf16 MXU / slab-build path
    zw = widen(z_t).astype(jnp.bfloat16)

    # f32 residual z_t, already in output-column layout (junk columns zero).
    zr = jnp.pad(z_t.astype(f32), ((0, 0), (0, 0), (0, 0), (0, Wp - W)))
    zr = zr.reshape(B, C, Lout)
    zr = jnp.pad(zr, ((0, 0), (0, 0), (0, S - Lout)))
    zr = zr.transpose(1, 0, 2).reshape(C, B * S)

    # ---- weights: (C2, Cin, fs, fs) -> (C2, K+1) bf16, bias folded ----------
    def flat_w(w, b):
        wf = w.astype(f32).transpose(0, 2, 3, 1).reshape(C2, K)   # tap-major/cin-minor
        return jnp.concatenate([wf, b.astype(f32).reshape(C2, 1)], axis=1)

    w_both = jnp.stack([flat_w(params["wx"], params["bx"]),
                        flat_w(params["wz"], params["bz"])],
                       axis=0).astype(jnp.bfloat16)               # (2, C2, K+1)

    # ---- LN affine + valid-column mask: per-sample (.., S) slabs, f32 -------
    def flat_g(g):
        gp = jnp.pad(g.astype(f32), ((0, 0), (0, 0), (0, Wp - W))).reshape(C2, Lout)
        return jnp.pad(gp, ((0, 0), (0, S - Lout)))

    mask = jnp.pad(jnp.ones((1, H, W), f32), ((0, 0), (0, 0), (0, Wp - W)))
    mask = jnp.pad(mask.reshape(1, Lout), ((0, 0), (0, S - Lout)))
    consts = jnp.concatenate([flat_g(params["gx"]), flat_g(params["btx"]),
                              flat_g(params["gz"]), flat_g(params["btz"]), mask],
                             axis=0)                              # (4*C2+1, S)

    kernel = _make_ghu_kernel(num_hidden=num_hidden, height=H, width=W,
                              width_pad=Wp, s_blk=S, filter_size=fs,
                              batch_block=bt)

    lane_blk = lambda i: (0, i)

    out = pl.pallas_call(
        kernel,
        out_shape=jax.ShapeDtypeStruct((C, B * S), f32),
        grid_spec=pltpu.PrefetchScalarGridSpec(
            num_scalar_prefetch=0,
            grid=(B // bt,),
            in_specs=[
                pl.BlockSpec((Cin, Wtot), lane_blk),                  # x (bf16)
                pl.BlockSpec((Cin, Wtot), lane_blk),                  # z (bf16)
                pl.BlockSpec((C, Wtot), lane_blk),                    # z residual (f32)
                pl.BlockSpec((2, C2, K + 1), lambda i: (0, 0, 0)),    # conv weights
                pl.BlockSpec((4 * C2 + 1, S), lambda i: (0, 0)),      # LN consts
            ],
            out_specs=pl.BlockSpec((C, Wtot), lane_blk),
            scratch_shapes=[pltpu.VMEM((C2, Wtot), f32),              # conv_x result
                            pltpu.VMEM((C2, Wtot), f32)],             # conv_z result
        ),
        compiler_params=pltpu.CompilerParams(
            dimension_semantics=("parallel",),
            vmem_limit_bytes=_vmem_limit_bytes(cin=Cin, c=C, c2=C2, k=K, s=S, bt=bt),
        ),
    )(xw, zw, zr, w_both, consts)

    # Lane-dense (C, B*S) back to NCHW, dropping width padding and junk lanes.
    out = out.reshape(C, B, S).transpose(1, 0, 2)[:, :, :Lout]
    return out.reshape(B, C, H, Wp)[:, :, :, :W]


# ---------------------------------------------------------------------------
# Pure-JAX reference (for correctness checking of the kernel).
# ---------------------------------------------------------------------------
def ghu_reference(x_t, z_t, params, *, num_hidden, filter_size):
    pad = filter_size // 2

    def conv_ln(inp, w, b, gamma, beta):
        y = jax.lax.conv_general_dilated(
            inp, w, window_strides=(1, 1), padding=[(pad, pad), (pad, pad)],
            dimension_numbers=("NCHW", "OIHW", "NCHW")) + b[None, :, None, None]
        mu = y.mean(axis=(1, 2, 3), keepdims=True)
        var = ((y - mu) ** 2).mean(axis=(1, 2, 3), keepdims=True)
        return (y - mu) / jnp.sqrt(var + LN_EPS) * gamma[None] + beta[None]

    x_concat = conv_ln(x_t, params["wx"], params["bx"], params["gx"], params["btx"])
    z_concat = conv_ln(z_t, params["wz"], params["bz"], params["gz"], params["btz"])
    p_x, s_x = x_concat[:, :num_hidden], x_concat[:, num_hidden:]
    p_z, s_z = z_concat[:, :num_hidden], z_concat[:, num_hidden:]
    p_t = jnp.tanh(p_x + p_z)
    s_t = jax.nn.sigmoid(s_x + s_z)
    return s_t * p_t + (1.0 - s_t) * z_t


# ---------------------------------------------------------------------------
if __name__ == "__main__":
    # in_channel must equal num_hidden for the (1 - s_t) * z_t residual.
    batch, num_hidden, width, filter_size = 4, 8, 16, 3
    in_channel = num_hidden

    key = jax.random.PRNGKey(0)
    ks = jax.random.split(key, 10)
    C2 = 2 * num_hidden

    params = {
        "wx": 0.1 * jax.random.normal(ks[0], (C2, in_channel, filter_size, filter_size), jnp.float32),
        "bx": 0.1 * jax.random.normal(ks[1], (C2,), jnp.float32),
        "wz": 0.1 * jax.random.normal(ks[2], (C2, in_channel, filter_size, filter_size), jnp.float32),
        "bz": 0.1 * jax.random.normal(ks[3], (C2,), jnp.float32),
        "gx": 1.0 + 0.05 * jax.random.normal(ks[4], (C2, width, width), jnp.float32),
        "btx": 0.05 * jax.random.normal(ks[5], (C2, width, width), jnp.float32),
        "gz": 1.0 + 0.05 * jax.random.normal(ks[6], (C2, width, width), jnp.float32),
        "btz": 0.05 * jax.random.normal(ks[7], (C2, width, width), jnp.float32),
    }

    x_t = jax.random.normal(ks[8], (batch, in_channel, width, width), jnp.float32)
    z_t = jax.random.normal(ks[9], (batch, in_channel, width, width), jnp.float32)

    z_new = ghu_forward(x_t, z_t, params, num_hidden=num_hidden,
                        width=width, filter_size=filter_size)
    jax.block_until_ready(z_new)

    z_ref = ghu_reference(x_t, z_t, params, num_hidden=num_hidden,
                          filter_size=filter_size)
    assert z_new.shape == (batch, num_hidden, width, width)
    # Tolerance covers the intentional bf16 quantization of the MXU operands
    # (f32 accumulation); structural bugs would produce O(1) errors.
    err = float(jnp.max(jnp.abs(z_new - z_ref)))
    assert err < 5e-2, err

    print("KERNEL_OK")
</pallas_src>

<mosaic_0001>
module attributes {stable_mosaic.version = 11 : i64} {
  func.func @kernel(%arg0: i32, %arg1: memref<8x768xbf16, #tpu.memory_space<vmem>>, %arg2: memref<8x768xbf16, #tpu.memory_space<vmem>>, %arg3: memref<8x768xf32, #tpu.memory_space<vmem>>, %arg4: memref<2x16x73xbf16, #tpu.memory_space<vmem>>, %arg5: memref<65x384xf32, #tpu.memory_space<vmem>>, %arg6: memref<8x768xf32, #tpu.memory_space<vmem>>, %arg7: memref<16x768xf32, #tpu.memory_space<vmem>>, %arg8: memref<16x768xf32, #tpu.memory_space<vmem>>) attributes {dimension_semantics = [#tpu.dimension_semantics<parallel>], iteration_bounds = array<i64: 2>, scalar_prefetch = 0 : i64, scratch_operands = 2 : i64, tpu.core_type = #tpu.core_type<tc>, window_params = [{transform_indices = @transform_0, window_bounds = array<i64: 8, 768>}, {transform_indices = @transform_1, window_bounds = array<i64: 8, 768>}, {transform_indices = @transform_2, window_bounds = array<i64: 8, 768>}, {pipeline_mode = #tpu.pipeline_mode<synchronous>, transform_indices = @transform_3, window_bounds = array<i64: 2, 16, 73>}, {pipeline_mode = #tpu.pipeline_mode<synchronous>, transform_indices = @transform_4, window_bounds = array<i64: 65, 384>}, {transform_indices = @transform_5, window_bounds = array<i64: 8, 768>}]} {
    %c0 = arith.constant 0 : index
    %c0_0 = arith.constant 0 : index
    %c0_1 = arith.constant 0 : index
    %0 = vector.load %arg4[%c0, %c0_0, %c0_1] : memref<2x16x73xbf16, #tpu.memory_space<vmem>>, vector<1x16x73xbf16>
    %1 = vector.shape_cast %0 : vector<1x16x73xbf16> to vector<16x73xbf16>
    %c1 = arith.constant 1 : index
    %c0_2 = arith.constant 0 : index
    %c0_3 = arith.constant 0 : index
    %2 = vector.load %arg4[%c1, %c0_2, %c0_3] : memref<2x16x73xbf16, #tpu.memory_space<vmem>>, vector<1x16x73xbf16>
    %3 = vector.shape_cast %2 : vector<1x16x73xbf16> to vector<16x73xbf16>
    %c0_4 = arith.constant 0 : index
    %c0_5 = arith.constant 0 : index
    %4 = vector.load %arg5[%c0_4, %c0_5] : memref<65x384xf32, #tpu.memory_space<vmem>>, vector<16x384xf32>
    %c16 = arith.constant 16 : index
    %c0_6 = arith.constant 0 : index
    %5 = vector.load %arg5[%c16, %c0_6] : memref<65x384xf32, #tpu.memory_space<vmem>>, vector<16x384xf32>
    %c32 = arith.constant 32 : index
    %c0_7 = arith.constant 0 : index
    %6 = vector.load %arg5[%c32, %c0_7] : memref<65x384xf32, #tpu.memory_space<vmem>>, vector<16x384xf32>
    %c48 = arith.constant 48 : index
    %c0_8 = arith.constant 0 : index
    %7 = vector.load %arg5[%c48, %c0_8] : memref<65x384xf32, #tpu.memory_space<vmem>>, vector<16x384xf32>
    %c64 = arith.constant 64 : index
    %c0_9 = arith.constant 0 : index
    %8 = vector.load %arg5[%c64, %c0_9] : memref<65x384xf32, #tpu.memory_space<vmem>>, vector<1x384xf32>
    %cst = arith.constant 1.000000e+00 : bf16
    %9 = vector.broadcast %cst : bf16 to vector<1x768xbf16>
    %c0_10 = arith.constant 0 : index
    %c0_11 = arith.constant 0 : index
    %10 = vector.load %arg1[%c0_10, %c0_11] : memref<8x768xbf16, #tpu.memory_space<vmem>>, vector<8x768xbf16>
    %cst_12 = arith.constant 0.000000e+00 : bf16
    %11 = vector.broadcast %cst_12 : bf16 to vector<8x1xbf16>
    %12 = vector.extract_strided_slice %10 {offsets = [0, 1], sizes = [8, 767], strides = [1, 1]} : vector<8x768xbf16> to vector<8x767xbf16>
    %13 = tpu.concatenate %12, %11 in 1 : vector<8x767xbf16>, vector<8x1xbf16> -> vector<8x768xbf16>
    %cst_13 = arith.constant 0.000000e+00 : bf16
    %14 = vector.broadcast %cst_13 : bf16 to vector<8x2xbf16>
    %15 = vector.extract_strided_slice %10 {offsets = [0, 2], sizes = [8, 766], strides = [1, 1]} : vector<8x768xbf16> to vector<8x766xbf16>
    %16 = tpu.concatenate %15, %14 in 1 : vector<8x766xbf16>, vector<8x2xbf16> -> vector<8x768xbf16>
    %cst_14 = arith.constant 0.000000e+00 : bf16
    %17 = vector.broadcast %cst_14 : bf16 to vector<8x18xbf16>
    %18 = vector.extract_strided_slice %10 {offsets = [0, 18], sizes = [8, 750], strides = [1, 1]} : vector<8x768xbf16> to vector<8x750xbf16>
    %19 = tpu.concatenate %18, %17 in 1 : vector<8x750xbf16>, vector<8x18xbf16> -> vector<8x768xbf16>
    %cst_15 = arith.constant 0.000000e+00 : bf16
    %20 = vector.broadcast %cst_15 : bf16 to vector<8x19xbf16>
    %21 = vector.extract_strided_slice %10 {offsets = [0, 19], sizes = [8, 749], strides = [1, 1]} : vector<8x768xbf16> to vector<8x749xbf16>
    %22 = tpu.concatenate %21, %20 in 1 : vector<8x749xbf16>, vector<8x19xbf16> -> vector<8x768xbf16>
    %cst_16 = arith.constant 0.000000e+00 : bf16
    %23 = vector.broadcast %cst_16 : bf16 to vector<8x20xbf16>
    %24 = vector.extract_strided_slice %10 {offsets = [0, 20], sizes = [8, 748], strides = [1, 1]} : vector<8x768xbf16> to vector<8x748xbf16>
    %25 = tpu.concatenate %24, %23 in 1 : vector<8x748xbf16>, vector<8x20xbf16> -> vector<8x768xbf16>
    %cst_17 = arith.constant 0.000000e+00 : bf16
    %26 = vector.broadcast %cst_17 : bf16 to vector<8x36xbf16>
    %27 = vector.extract_strided_slice %10 {offsets = [0, 36], sizes = [8, 732], strides = [1, 1]} : vector<8x768xbf16> to vector<8x732xbf16>
    %28 = tpu.concatenate %27, %26 in 1 : vector<8x732xbf16>, vector<8x36xbf16> -> vector<8x768xbf16>
    %cst_18 = arith.constant 0.000000e+00 : bf16
    %29 = vector.broadcast %cst_18 : bf16 to vector<8x37xbf16>
    %30 = vector.extract_strided_slice %10 {offsets = [0, 37], sizes = [8, 731], strides = [1, 1]} : vector<8x768xbf16> to vector<8x731xbf16>
    %31 = tpu.concatenate %30, %29 in 1 : vector<8x731xbf16>, vector<8x37xbf16> -> vector<8x768xbf16>
    %cst_19 = arith.constant 0.000000e+00 : bf16
    %32 = vector.broadcast %cst_19 : bf16 to vector<8x38xbf16>
    %33 = vector.extract_strided_slice %10 {offsets = [0, 38], sizes = [8, 730], strides = [1, 1]} : vector<8x768xbf16> to vector<8x730xbf16>
    %34 = tpu.concatenate %33, %32 in 1 : vector<8x730xbf16>, vector<8x38xbf16> -> vector<8x768xbf16>
    %35 = tpu.concatenate %10, %13, %16, %19, %22, %25, %28, %31, %34, %9 in 0 : vector<8x768xbf16>, vector<8x768xbf16>, vector<8x768xbf16>, vector<8x768xbf16>, vector<8x768xbf16>, vector<8x768xbf16>, vector<8x768xbf16>, vector<8x768xbf16>, vector<8x768xbf16>, vector<1x768xbf16> -> vector<73x768xbf16>
    %cst_20 = arith.constant dense<0.000000e+00> : vector<16x768xf32>
    %36 = tpu.matmul %1, %35, %cst_20 {dimension_numbers = #tpu.dot_dimension_numbers<[1], [0], [0], [1], [0, 0, 1, 1], [], []>} : vector<16x73xbf16>, vector<73x768xbf16>, vector<16x768xf32> -> vector<16x768xf32>
    %c0_21 = arith.constant 0 : index
    %c0_22 = arith.constant 0 : index
    %37 = vector.load %arg7[%c0_21, %c0_22] : memref<16x768xf32, #tpu.memory_space<vmem>>, vector<16x768xf32>
    tpu.vector_store %arg7[%c0_21, %c0_22], %36 {strides = array<i32>} : memref<16x768xf32, #tpu.memory_space<vmem>>, vector<16x768xf32>,
    %c0_23 = arith.constant 0 : index
    %c0_24 = arith.constant 0 : index
    %38 = vector.load %arg2[%c0_23, %c0_24] : memref<8x768xbf16, #tpu.memory_space<vmem>>, vector<8x768xbf16>
    %cst_25 = arith.constant 0.000000e+00 : bf16
    %39 = vector.broadcast %cst_25 : bf16 to vector<8x1xbf16>
    %40 = vector.extract_strided_slice %38 {offsets = [0, 1], sizes = [8, 767], strides = [1, 1]} : vector<8x768xbf16> to vector<8x767xbf16>
    %41 = tpu.concatenate %40, %39 in 1 : vector<8x767xbf16>, vector<8x1xbf16> -> vector<8x768xbf16>
    %cst_26 = arith.constant 0.000000e+00 : bf16
    %42 = vector.broadcast %cst_26 : bf16 to vector<8x2xbf16>
    %43 = vector.extract_strided_slice %38 {offsets = [0, 2], sizes = [8, 766], strides = [1, 1]} : vector<8x768xbf16> to vector<8x766xbf16>
    %44 = tpu.concatenate %43, %42 in 1 : vector<8x766xbf16>, vector<8x2xbf16> -> vector<8x768xbf16>
    %cst_27 = arith.constant 0.000000e+00 : bf16
    %45 = vector.broadcast %cst_27 : bf16 to vector<8x18xbf16>
    %46 = vector.extract_strided_slice %38 {offsets = [0, 18], sizes = [8, 750], strides = [1, 1]} : vector<8x768xbf16> to vector<8x750xbf16>
    %47 = tpu.concatenate %46, %45 in 1 : vector<8x750xbf16>, vector<8x18xbf16> -> vector<8x768xbf16>
    %cst_28 = arith.constant 0.000000e+00 : bf16
    %48 = vector.broadcast %cst_28 : bf16 to vector<8x19xbf16>
    %49 = vector.extract_strided_slice %38 {offsets = [0, 19], sizes = [8, 749], strides = [1, 1]} : vector<8x768xbf16> to vector<8x749xbf16>
    %50 = tpu.concatenate %49, %48 in 1 : vector<8x749xbf16>, vector<8x19xbf16> -> vector<8x768xbf16>
    %cst_29 = arith.constant 0.000000e+00 : bf16
    %51 = vector.broadcast %cst_29 : bf16 to vector<8x20xbf16>
    %52 = vector.extract_strided_slice %38 {offsets = [0, 20], sizes = [8, 748], strides = [1, 1]} : vector<8x768xbf16> to vector<8x748xbf16>
    %53 = tpu.concatenate %52, %51 in 1 : vector<8x748xbf16>, vector<8x20xbf16> -> vector<8x768xbf16>
    %cst_30 = arith.constant 0.000000e+00 : bf16
    %54 = vector.broadcast %cst_30 : bf16 to vector<8x36xbf16>
    %55 = vector.extract_strided_slice %38 {offsets = [0, 36], sizes = [8, 732], strides = [1, 1]} : vector<8x768xbf16> to vector<8x732xbf16>
    %56 = tpu.concatenate %55, %54 in 1 : vector<8x732xbf16>, vector<8x36xbf16> -> vector<8x768xbf16>
    %cst_31 = arith.constant 0.000000e+00 : bf16
    %57 = vector.broadcast %cst_31 : bf16 to vector<8x37xbf16>
    %58 = vector.extract_strided_slice %38 {offsets = [0, 37], sizes = [8, 731], strides = [1, 1]} : vector<8x768xbf16> to vector<8x731xbf16>
    %59 = tpu.concatenate %58, %57 in 1 : vector<8x731xbf16>, vector<8x37xbf16> -> vector<8x768xbf16>
    %cst_32 = arith.constant 0.000000e+00 : bf16
    %60 = vector.broadcast %cst_32 : bf16 to vector<8x38xbf16>
    %61 = vector.extract_strided_slice %38 {offsets = [0, 38], sizes = [8, 730], strides = [1, 1]} : vector<8x768xbf16> to vector<8x730xbf16>
    %62 = tpu.concatenate %61, %60 in 1 : vector<8x730xbf16>, vector<8x38xbf16> -> vector<8x768xbf16>
    %63 = tpu.concatenate %38, %41, %44, %47, %50, %53, %56, %59, %62, %9 in 0 : vector<8x768xbf16>, vector<8x768xbf16>, vector<8x768xbf16>, vector<8x768xbf16>, vector<8x768xbf16>, vector<8x768xbf16>, vector<8x768xbf16>, vector<8x768xbf16>, vector<8x768xbf16>, vector<1x768xbf16> -> vector<73x768xbf16>
    %cst_33 = arith.constant dense<0.000000e+00> : vector<16x768xf32>
    %64 = tpu.matmul %3, %63, %cst_33 {dimension_numbers = #tpu.dot_dimension_numbers<[1], [0], [0], [1], [0, 0, 1, 1], [], []>} : vector<16x73xbf16>, vector<73x768xbf16>, vector<16x768xf32> -> vector<16x768xf32>
    %c0_34 = arith.constant 0 : index
    %c0_35 = arith.constant 0 : index
    %65 = vector.load %arg8[%c0_34, %c0_35] : memref<16x768xf32, #tpu.memory_space<vmem>>, vector<16x768xf32>
    tpu.vector_store %arg8[%c0_34, %c0_35], %64 {strides = array<i32>} : memref<16x768xf32, #tpu.memory_space<vmem>>, vector<16x768xf32>,
    %c0_i32 = arith.constant 0 : i32
    %c2_i32 = arith.constant 2 : i32
    %66 = arith.addi %c0_i32, %c2_i32 : i32
    %c1_i32 = arith.constant 1 : i32
    scf.for %arg9 = %c0_i32 to %66 step %c1_i32  : i32 {
      %c384_i32 = arith.constant 384 : i32
      %67 = arith.muli %arg9, %c384_i32 : i32
      %68 = tpu.assume_multiple %67, 128 : i32
      %c0_37 = arith.constant 0 : index
      %69 = arith.index_cast %68 : i32 to index
      %70 = vector.load %arg7[%c0_37, %69] : memref<16x768xf32, #tpu.memory_space<vmem>>, vector<16x384xf32>
      %71 = vector.broadcast %8 : vector<1x384xf32> to vector<16x384xf32>
      %72 = arith.mulf %70, %71 : vector<16x384xf32>
      %73 = vector.shape_cast %72 : vector<16x384xf32> to vector<1x16x384xf32>
      %cst_38 = arith.constant dense<0.000000e+00> : vector<1xf32>
      %74 = vector.multi_reduction <add>, %73, %cst_38 [1, 2] : vector<1x16x384xf32> to vector<1xf32>
      %75 = vector.shape_cast %74 : vector<1xf32> to vector<1x1x1xf32>
      %76 = vector.extract %75[0, 0, 0] : f32 from vector<1x1x1xf32>
      %77 = vector.broadcast %76 : f32 to vector<1x1xf32>
      %78 = arith.mulf %72, %72 : vector<16x384xf32>
      %79 = vector.shape_cast %78 : vector<16x384xf32> to vector<1x16x384xf32>
      %cst_39 = arith.constant dense<0.000000e+00> : vector<1xf32>
      %80 = vector.multi_reduction <add>, %79, %cst_39 [1, 2] : vector<1x16x384xf32> to vector<1xf32>
      %81 = vector.shape_cast %80 : vector<1xf32> to vector<1x1x1xf32>
      %82 = vector.extract %81[0, 0, 0] : f32 from vector<1x1x1xf32>
      %83 = vector.broadcast %82 : f32 to vector<1x1xf32>
      %cst_40 = arith.constant 2.44140625E-4 : f32
      %84 = vector.broadcast %cst_40 : f32 to vector<1x1xf32>
      %85 = arith.mulf %77, %84 : vector<1x1xf32>
      %cst_41 = arith.constant 2.44140625E-4 : f32
      %86 = vector.broadcast %cst_41 : f32 to vector<1x1xf32>
      %87 = arith.mulf %83, %86 : vector<1x1xf32>
      %88 = arith.mulf %85, %85 : vector<1x1xf32>
      %89 = arith.subf %87, %88 : vector<1x1xf32>
      %cst_42 = arith.constant 9.99999974E-6 : f32
      %90 = vector.broadcast %cst_42 : f32 to vector<1x1xf32>
      %91 = arith.addf %89, %90 : vector<1x1xf32>
      %92 = math.rsqrt %91 : vector<1x1xf32>
      %93 = vector.broadcast %85 : vector<1x1xf32> to vector<16x384xf32>
      %94 = arith.subf %70, %93 : vector<16x384xf32>
      %95 = vector.broadcast %92 : vector<1x1xf32> to vector<16x384xf32>
      %96 = arith.mulf %94, %95 : vector<16x384xf32>
      %97 = arith.mulf %96, %4 : vector<16x384xf32>
      %98 = arith.addf %97, %5 : vector<16x384xf32>
      %c0_43 = arith.constant 0 : index
      %99 = arith.index_cast %68 : i32 to index
      %100 = vector.load %arg8[%c0_43, %99] : memref<16x768xf32, #tpu.memory_space<vmem>>, vector<16x384xf32>
      %101 = vector.broadcast %8 : vector<1x384xf32> to vector<16x384xf32>
      %102 = arith.mulf %100, %101 : vector<16x384xf32>
      %103 = vector.shape_cast %102 : vector<16x384xf32> to vector<1x16x384xf32>
      %cst_44 = arith.constant dense<0.000000e+00> : vector<1xf32>
      %104 = vector.multi_reduction <add>, %103, %cst_44 [1, 2] : vector<1x16x384xf32> to vector<1xf32>
      %105 = vector.shape_cast %104 : vector<1xf32> to vector<1x1x1xf32>
      %106 = vector.extract %105[0, 0, 0] : f32 from vector<1x1x1xf32>
      %107 = vector.broadcast %106 : f32 to vector<1x1xf32>
      %108 = arith.mulf %102, %102 : vector<16x384xf32>
      %109 = vector.shape_cast %108 : vector<16x384xf32> to vector<1x16x384xf32>
      %cst_45 = arith.constant dense<0.000000e+00> : vector<1xf32>
      %110 = vector.multi_reduction <add>, %109, %cst_45 [1, 2] : vector<1x16x384xf32> to vector<1xf32>
      %111 = vector.shape_cast %110 : vector<1xf32> to vector<1x1x1xf32>
      %112 = vector.extract %111[0, 0, 0] : f32 from vector<1x1x1xf32>
      %113 = vector.broadcast %112 : f32 to vector<1x1xf32>
      %cst_46 = arith.constant 2.44140625E-4 : f32
      %114 = vector.broadcast %cst_46 : f32 to vector<1x1xf32>
      %115 = arith.mulf %107, %114 : vector<1x1xf32>
      %cst_47 = arith.constant 2.44140625E-4 : f32
      %116 = vector.broadcast %cst_47 : f32 to vector<1x1xf32>
      %117 = arith.mulf %113, %116 : vector<1x1xf32>
      %118 = arith.mulf %115, %115 : vector<1x1xf32>
      %119 = arith.subf %117, %118 : vector<1x1xf32>
      %cst_48 = arith.constant 9.99999974E-6 : f32
      %120 = vector.broadcast %cst_48 : f32 to vector<1x1xf32>
      %121 = arith.addf %119, %120 : vector<1x1xf32>
      %122 = math.rsqrt %121 : vector<1x1xf32>
      %123 = vector.broadcast %115 : vector<1x1xf32> to vector<16x384xf32>
      %124 = arith.subf %100, %123 : vector<16x384xf32>
      %125 = vector.broadcast %122 : vector<1x1xf32> to vector<16x384xf32>
      %126 = arith.mulf %124, %125 : vector<16x384xf32>
      %127 = arith.mulf %126, %6 : vector<16x384xf32>
      %128 = arith.addf %127, %7 : vector<16x384xf32>
      %129 = vector.extract_strided_slice %98 {offsets = [0, 0], sizes = [8, 384], strides = [1, 1]} : vector<16x384xf32> to vector<8x384xf32>
      %130 = vector.extract_strided_slice %128 {offsets = [0, 0], sizes = [8, 384], strides = [1, 1]} : vector<16x384xf32> to vector<8x384xf32>
      %131 = arith.addf %129, %130 : vector<8x384xf32>
      %132 = math.tanh %131 : vector<8x384xf32>
      %133 = vector.extract_strided_slice %98 {offsets = [8, 0], sizes = [8, 384], strides = [1, 1]} : vector<16x384xf32> to vector<8x384xf32>
      %134 = vector.extract_strided_slice %128 {offsets = [8, 0], sizes = [8, 384], strides = [1, 1]} : vector<16x384xf32> to vector<8x384xf32>
      %135 = arith.addf %133, %134 : vector<8x384xf32>
      %136 = arith.negf %135 : vector<8x384xf32>
      %137 = math.exp %136 : vector<8x384xf32>
      %cst_49 = arith.constant 1.000000e+00 : f32
      %138 = vector.broadcast %cst_49 : f32 to vector<8x384xf32>
      %139 = arith.addf %138, %137 : vector<8x384xf32>
      %140 = arith.divf %138, %139 : vector<8x384xf32>
      %c0_50 = arith.constant 0 : index
      %141 = arith.index_cast %68 : i32 to index
      %142 = vector.load %arg3[%c0_50, %141] : memref<8x768xf32, #tpu.memory_space<vmem>>, vector<8x384xf32>
      %143 = arith.mulf %140, %132 : vector<8x384xf32>
      %cst_51 = arith.constant 1.000000e+00 : f32
      %144 = vector.broadcast %cst_51 : f32 to vector<8x384xf32>
      %145 = arith.subf %144, %140 : vector<8x384xf32>
      %146 = arith.mulf %145, %142 : vector<8x384xf32>
      %147 = arith.addf %143, %146 : vector<8x384xf32>
      %c0_52 = arith.constant 0 : index
      %148 = arith.index_cast %68 : i32 to index
      %149 = vector.load %arg6[%c0_52, %148] : memref<8x768xf32, #tpu.memory_space<vmem>>, vector<8x384xf32>
      tpu.vector_store %arg6[%c0_52, %148], %147 {strides = array<i32>} : memref<8x768xf32, #tpu.memory_space<vmem>>, vector<8x384xf32>,
    }
    %c2_i32_36 = arith.constant 2 : i32
    return
  }
  func.func @transform_0(%arg0: i32) -> (i32, i32) {
    %c0_i32 = arith.constant 0 : i32
    %c0_i32_0 = arith.constant 0 : i32
    return %c0_i32, %arg0 : i32, i32
  }
  func.func @transform_1(%arg0: i32) -> (i32, i32) {
    %c0_i32 = arith.constant 0 : i32
    %c0_i32_0 = arith.constant 0 : i32
    return %c0_i32, %arg0 : i32, i32
  }
  func.func @transform_2(%arg0: i32) -> (i32, i32) {
    %c0_i32 = arith.constant 0 : i32
    %c0_i32_0 = arith.constant 0 : i32
    return %c0_i32, %arg0 : i32, i32
  }
  func.func @transform_3(%arg0: i32) -> (i32, i32, i32) {
    %c0_i32 = arith.constant 0 : i32
    %c0_i32_0 = arith.constant 0 : i32
    %c0_i32_1 = arith.constant 0 : i32
    %c0_i32_2 = arith.constant 0 : i32
    return %c0_i32, %c0_i32_0, %c0_i32_1 : i32, i32, i32
  }
  func.func @transform_4(%arg0: i32) -> (i32, i32) {
    %c0_i32 = arith.constant 0 : i32
    %c0_i32_0 = arith.constant 0 : i32
    %c0_i32_1 = arith.constant 0 : i32
    return %c0_i32, %c0_i32_0 : i32, i32
  }
  func.func @transform_5(%arg0: i32) -> (i32, i32) {
    %c0_i32 = arith.constant 0 : i32
    %c0_i32_0 = arith.constant 0 : i32
    return %c0_i32, %arg0 : i32, i32
  }
}

</mosaic_0001>

<bundles_post_ra>
// kernel: tpu_custom_call.1
= control target key start
LH: loop header
LB: loop body
LE: loop exit
PB: predicated region body
PF: predicated region fallthrough
CT: control target
= control target key end

     0   :  { %s3153_s0 = inlined_call_operand.hbm [shape: bf16[8,1536], index: 0, kind: input, shape index: {}]   ;;  %s3154_s1 = inlined_call_operand.hbm [shape: bf16[8,1536], index: 1, kind: input, shape index: {}]   ;;  %s3155_s2 = inlined_call_operand.hbm [shape: f32[8,1536], index: 2, kind: input, shape index: {}]   ;;  %s3156_s3 = inlined_call_operand.hbm [shape: bf16[2,16,73], index: 3, kind: input, shape index: {}]   ;;  %s3157_s4 = inlined_call_operand.hbm [shape: f32[65,384], index: 4, kind: input, shape index: {}]   ;;  %s3158_s5 = inlined_call_operand.hbm [shape: f32[8,1536], index: 5, kind: output, shape index: {}]  }
   0x1   :  { %3173 = sst [smem:[#allocation26_spill]] %s3154_s1 }
   0x2   :  { %3174 = sst [smem:[#allocation27_spill]] %s3156_s3 }
   0x3   :  { %10 = vsyncpa [#allocation5], 0 }
   0x4   :  { %12 = vsyncpa [#allocation5 + $0x1], 0 }
   0x5   :  { %13 = vsyncpa [#allocation8], 0 }
   0x6   :  { %15 = vsyncpa [#allocation8 + $0x1], 0 }
   0x7   :  { %16 = vsyncpa [#allocation11], 0 }
   0x8   :  { %17 = vsyncpa [#allocation6], 0 }
   0x9   :  { %19 = vsyncpa [#allocation6 + $0x1], 0  ;;  %s2196_s18 = smov 0   ;;  %s2198_s19 = smov 0  }
   0xa   :  { %s2200_s20 = smov 0   ;;  %s2202_s21 = smov 0  }
   0xb LB: > { %3175 = sst [smem:[#allocation18_spill]] %s2136_s20  ;;  %s2217_s22 = sadd.s32 4294967295, %s2140_s21   ;;  %s2140_s21 = sphi %s2202_s21, %s3211_s21   ;;  %s2136_s20 = sphi %s2200_s20, %s3213_s20   ;;  %s2132_s19 = sphi %s2198_s19, %s3215_s19   ;;  %s2128_s18 = sphi %s2196_s18, %s3214_s18  }
   0xc   : > { %s1723_s23 = sadd.s32 4294967294, %s2140_s21   ;;  %p45_p0 = scmp.ne.s32.totalorder %s2132_s19, %s2128_s18 }
   0xd   : > { %p3159_p1 = scmp.eq.s32.totalorder %s2217_s22, 0  ;;  %p169_p3 = scmp.eq.s32.totalorder %s1723_s23, 1 }
   0xe   : > { %p1724_p5 = scmp.ge.s32.totalorder %s2140_s21, 1  ;;  %p176_p7 = scmp.lt.s32.totalorder %s2140_s21, 3 }
   0xf   : > { %p2226_p4 = por %p3159_p1, %p45_p0  ;;  %p2231_p6 = por %p169_p3, %p45_p0 }
  0x10   : > { %p2236_p8 = pnand %p1724_p5, %p176_p7  ;;  %s2146_s27 = smov [#allocation10]  }
  0x11   : > { %s3176_s24 = scalar_select %p2226_p4, 1, 0 }
  0x12   : > { %s3177_s25 = scalar_select %p2231_p6, 1, 0 }
  0x13   : > { %s3178_s26 = scalar_select %p2236_p8, 1, 0 }
  0x14   : > { %s188_s28 = sshll.u32 %s2146_s27, 4  ;;  %p1797_p9 = pneg %p2236_p8  ;;  %s2240_s28 = int_to_ptr.vmem [resolvable:$true] %s188_s28 }
  0x15   : > { %s2252_s30 = sadd.s32 1, %s2140_s21   ;;  %s32_s6 = sadd.s32 1, %s2136_s20 }
  0x16   : > { %p2247_p11 = pnand %p1797_p9, %p3159_p1  ;;  %3180 = sst [smem:[#allocation19_spill]] %s2252_s30 }
  0x17   : > { %s29_s7 = ssub.s32 %s2140_s21, %s2252_s30  ;;  %s3181_s3 = sld [smem:[#allocation27_spill]] }
  0x18   : > { %s3179_s29 = scalar_select %p2247_p11, 1, 0 }
  0x19   : > { %p3162_p13 = pneg %p2247_p11 }
  0x1d   : > { %s1916_s10 = scalar_lea.hbm %s3181_s3, 256 }
  0x1e   : > { %p1917_p12 = scmp.ne.s32.totalorder %s3181_s3, %s1916_s10  ;;  %p1923_p5 = scmp.lt.u32.totalorder %s1916_s10, %s3181_s3 }
  0x20   : > { %p1919_p0 = pnand %p3162_p13, %p1917_p12 }
  0x22   : > { %p1920_p3 = pneg %p1919_p0 }
  0x24   : > { %p1925_p7 = pnand %p1923_p5, %p1920_p3 }
  0x26   : > { %1928 = shalt.err (!%p1925_p7)
}
  0x27   : > { %s1929_s15 = scalar_lea.vmem %s2240_s28, 256  ;;  %p1937_p2 = scmp.lt.s32.totalorder %s2240_s28, %s2240_s28 }
  0x28   : > { %p1930_p9 = scmp.ne.s32.totalorder %s2240_s28, %s1929_s15  ;;  %p1938_p12 = scmp.lt.s32.totalorder %s1929_s15, %s1929_s15 }
  0x2a   : > { %p1932_p10 = pnand %p1930_p9, %p3162_p13  ;;  %p1939_p0 = por %p1938_p12, %p1937_p2 }
  0x2c   : > { %p1933_p1 = pneg %p1932_p10 }
  0x2e   : > { %p1940_p6 = pnand %p1939_p0, %p1933_p1 }
  0x30   : > { %1943 = shalt.err (!%p1940_p6)
}
  0x31   : > { %s2147_s16 = smov 64   ;;  %s2148_s17 = smov 4  }
  0x32   : > { %1800 = dma.hbm_to_vmem [thread:$0]  (!%p2247_p11), %s3181_s3, 256, %s2240_s28, [#allocation11], %s2147_s16, %s2147_s16, %s2148_s17  }
  0x33   : > { %p30_p1 = scmp.eq.s32.totalorder %s29_s7, 0  ;;  %p39_p2 = scmp.ne.s32.totalorder %s2136_s20, %s2132_s19 }
  0x34   : > { %p40_p6 = scmp.eq.s32.totalorder %s2140_s21, 0  ;;  %p1820_p10 = scmp.lt.s32.totalorder %s2140_s21, 2 }
  0x35   : > { %s2289_s8 = scalar_select %p30_p1, %s2136_s20, %s32_s6  }
  0x36   : > { %p41_p3 = por %p40_p6, %p39_p2  ;;  %p3183_p5 = scmp.eq.s32.totalorder %s2217_s22, 1 }
  0x37   : > { %3182 = sst [smem:[#allocation20_spill]] %s2289_s8  ;;  %s2298_s10 = sand.u32 1, %s2136_s20  }
  0x38   : > { %p2293_p7 = por %p3183_p5, %p39_p2  ;;  %s3161_s11 = smul.u32 384, %s2140_s21 }
  0x39   : > { %s3160_s12 = smul.u32 24, %s2298_s10  ;;  %p2302_p9 = pnand %p1820_p10, %p41_p3 }
  0x3a   : > { %s3184_s9 = scalar_select %p2293_p7, 1, 0 }
  0x3b   : > { %s3185_s28 = scalar_select %p2302_p9, 1, 0 }
  0x3c   : > { %s234_s7 = sand.u32 1, %s2140_s21   ;;  %s3186_s1 = sld [smem:[#allocation26_spill]] }
  0x3d   : > { %s238_s15 = scalar_lea.vmem [#allocation7], %s3160_s12  ;;  %s2149_s17 = smov [#allocation12]  }
  0x3e   : > { %s246_s16 = sshll.u32 %s238_s15, 4  ;;  %s201_s23 = sshll.u32 %s2149_s17, 4  ;;  %s2316_s16 = int_to_ptr.vmem [resolvable:$true] %s246_s16  ;;  %s2318_s23 = int_to_ptr.vmem [resolvable:$true] %s201_s23 }
  0x3f   : > { %s2320_s27 = scalar_lea.sflag [#allocation8], %s234_s7  ;;  %p2326_p0 = pneg %p2302_p9 }
  0x42   : > { %s2312_s14 = scalar_lea.hbm %s3186_s1, %s3161_s11  ;;  %s1949_s17 = scalar_lea.hbm %s3186_s1, 768 }
  0x43   : > { %s1944_s3 = scalar_lea.hbm %s2312_s14, 384  ;;  %p1950_p6 = scmp.lt.u32.totalorder %s2312_s14, %s3186_s1 }
  0x44   : > { %p1945_p12 = scmp.ne.s32.totalorder %s2312_s14, %s1944_s3  ;;  %p1951_p10 = scmp.lt.u32.totalorder %s1949_s17, %s1944_s3 }
  0x45   : > { %p1953_p5 = scmp.lt.u32.totalorder %s1944_s3, %s2312_s14 }
  0x46   : > { %p1947_p1 = pnand %p2326_p0, %p1945_p12  ;;  %p1952_p3 = por %p1951_p10, %p1950_p6 }
  0x48   : > { %p1948_p2 = pneg %p1947_p1  ;;  %p1954_p13 = por %p1953_p5, %p1952_p3 }
  0x4a   : > { %p1955_p7 = pnand %p1954_p13, %p1948_p2 }
  0x4c   : > { %1958 = shalt.err (!%p1955_p7)
}
  0x4d   : > { %s1959_s7 = scalar_lea.vmem %s2316_s16, 384  ;;  %s2150_s13 = smov [#allocation7]  }
  0x4e   : > { %p1960_p12 = scmp.ne.s32.totalorder %s2316_s16, %s1959_s7  ;;  %s1964_s15 = sshll.u32 %s2150_s13, 4  ;;  %s1965_s15 = int_to_ptr.vmem [resolvable:$false] %s1964_s15 }
  0x4f   : > { %s1966_s11 = scalar_lea.vmem %s1965_s15, 768  ;;  %p1967_p8 = scmp.lt.s32.totalorder %s2316_s16, %s1965_s15 }
  0x50   : > { %p1962_p1 = pnand %p1960_p12, %p2326_p0  ;;  %p1968_p11 = scmp.lt.s32.totalorder %s1966_s11, %s1959_s7 }
  0x52   : > { %p1963_p4 = pneg %p1962_p1  ;;  %p1969_p6 = por %p1968_p11, %p1967_p8 }
  0x54   : > { %p1970_p10 = pnand %p1969_p6, %p1963_p4 }
  0x56   : > { %1973 = shalt.err (!%p1970_p10)
}
  0x57   : > { %1810 = dma.hbm_to_vmem [thread:$0]  (!%p2302_p9), %s2312_s14, 384, %s2316_s16, %s2320_s27  }
  0x58   : > { %s1974_s17 = scalar_lea.hbm %s3157_s4, 3456  ;;  %p3188_p7 = scmp.ne.s32.totalorder %s3179_s29, 0 }
  0x59   : > { %p1975_p13 = scmp.ne.s32.totalorder %s3157_s4, %s1974_s17  ;;  %p1981_p11 = scmp.lt.u32.totalorder %s1974_s17, %s3157_s4 }
  0x5a   : > { %p3189_p2 = pneg %p3188_p7 }
  0x5c   : > { %p1977_p8 = pnand %p1975_p13, %p3189_p2 }
  0x5e   : > { %p1978_p4 = pneg %p1977_p8 }
  0x60   : > { %p1983_p3 = pnand %p1981_p11, %p1978_p4 }
  0x62   : > { %1986 = shalt.err (!%p1983_p3)
}
  0x63   : > { %s1987_s14 = scalar_lea.vmem %s2318_s23, 3456  ;;  %p3190_p12 = pmov %p3189_p2 }
  0x64   : > { %p1988_p5 = scmp.ne.s32.totalorder %s2318_s23, %s1987_s14  ;;  %p1995_p10 = scmp.lt.s32.totalorder %s2318_s23, %s2318_s23 }
  0x65   : > { %p1996_p13 = scmp.lt.s32.totalorder %s1987_s14, %s1987_s14 }
  0x66   : > { %p1990_p1 = pnand %p1988_p5, %p3190_p12 }
  0x67   : > { %p1997_p2 = por %p1996_p13, %p1995_p10 }
  0x68   : > { %p1991_p6 = pneg %p1990_p1 }
  0x6a   : > { %p1998_p8 = pnand %p1997_p2, %p1991_p6 }
  0x6c   : > { %2001 = shalt.err (!%p1998_p8)
}
  0x6d   : > { %s2151_s1 = smov 384   ;;  %s2152_s16 = smov 24  }
  0x6e   : > { %1803 = dma.hbm_to_vmem [thread:$0]  (!%p3188_p7), %s3157_s4, 3456, %s2318_s23, [#allocation11], %s2151_s1, %s2151_s1, %s2152_s16  }
  0x6f   : > { %s3191_s12 = smul.u32 384, %s2140_s21  ;;  %s216_s20 = scalar_lea.sflag [#allocation5], %s2298_s10 }
  0x70   : > { %s3192_s15 = smul.u32 24, %s2298_s10  ;;  %s2007_s16 = scalar_lea.hbm %s3153_s0, 768 }
  0x71   : > { %s2380_s7 = scalar_lea.hbm %s3153_s0, %s3191_s12  ;;  %s1770_s29 = smul.u32 48, %s2298_s10 }
  0x72   : > { %s219_s14 = scalar_lea.vmem [#allocation4], %s3192_s15  ;;  %s2002_s30 = scalar_lea.hbm %s2380_s7, 384 }
  0x73   : > { %s227_s8 = sshll.u32 %s219_s14, 4  ;;  %p2003_p4 = scmp.ne.s32.totalorder %s2380_s7, %s2002_s30  ;;  %s2384_s8 = int_to_ptr.vmem [resolvable:$true] %s227_s8 }
  0x74   : > { %p2008_p3 = scmp.lt.u32.totalorder %s2380_s7, %s3153_s0  ;;  %p2009_p5 = scmp.lt.u32.totalorder %s2007_s16, %s2002_s30 }
  0x75   : > { %p2005_p7 = pnand %p2003_p4, %p2326_p0  ;;  %p2011_p1 = scmp.lt.u32.totalorder %s2002_s30, %s2380_s7 }
  0x76   : > { %p2010_p12 = por %p2009_p5, %p2008_p3 }
  0x77   : > { %p2006_p11 = pneg %p2005_p7 }
  0x78   : > { %p2012_p6 = por %p2011_p1, %p2010_p12 }
  0x7a   : > { %p2013_p10 = pnand %p2012_p6, %p2006_p11 }
  0x7c   : > { %2016 = shalt.err (!%p2013_p10)
}
  0x7d   : > { %s2017_s12 = scalar_lea.vmem %s2384_s8, 384  ;;  %s2153_s17 = smov [#allocation4]  }
  0x7e   : > { %p2018_p13 = scmp.ne.s32.totalorder %s2384_s8, %s2017_s12  ;;  %s2022_s13 = sshll.u32 %s2153_s17, 4  ;;  %s2023_s13 = int_to_ptr.vmem [resolvable:$false] %s2022_s13 }
  0x7f   : > { %s2024_s15 = scalar_lea.vmem %s2023_s13, 768  ;;  %p2025_p4 = scmp.lt.s32.totalorder %s2384_s8, %s2023_s13 }
  0x80   : > { %p2020_p2 = pnand %p2018_p13, %p2326_p0  ;;  %p2026_p7 = scmp.lt.s32.totalorder %s2024_s15, %s2017_s12 }
  0x82   : > { %p2021_p8 = pneg %p2020_p2  ;;  %p2027_p3 = por %p2026_p7, %p2025_p4 }
  0x84   : > { %p2028_p5 = pnand %p2027_p3, %p2021_p8 }
  0x86   : > { %2031 = shalt.err (!%p2028_p5)
}
  0x87   : > { %1807 = dma.hbm_to_vmem [thread:$0]  (!%p2302_p9), %s2380_s7, 384, %s2384_s8, %s216_s20  }
  0x88   : > { %s1766_s30 = smul.u32 768, %s2140_s21  ;;  %s257_s14 = scalar_lea.vmem [#allocation9], %s1770_s29 }
  0x89   : > { %s265_s23 = sshll.u32 %s257_s14, 4  ;;  %s2037_s13 = scalar_lea.hbm %s3155_s2, 1536  ;;  %s266_s23 = int_to_ptr.vmem [resolvable:$true] %s265_s23 }
  0x8a   : > { %s263_s11 = scalar_lea.hbm %s3155_s2, %s1766_s30 }
  0x8b   : > { %s2032_s3 = scalar_lea.hbm %s263_s11, 768  ;;  %p2038_p6 = scmp.lt.u32.totalorder %s263_s11, %s3155_s2 }
  0x8c   : > { %p2033_p11 = scmp.ne.s32.totalorder %s263_s11, %s2032_s3  ;;  %p2039_p10 = scmp.lt.u32.totalorder %s2037_s13, %s2032_s3 }
  0x8d   : > { %p2041_p2 = scmp.lt.u32.totalorder %s2032_s3, %s263_s11 }
  0x8e   : > { %p2035_p12 = pnand %p2033_p11, %p2326_p0  ;;  %p2040_p13 = por %p2039_p10, %p2038_p6 }
  0x90   : > { %p2036_p1 = pneg %p2035_p12  ;;  %p2042_p8 = por %p2041_p2, %p2040_p13 }
  0x92   : > { %p2043_p4 = pnand %p2042_p8, %p2036_p1 }
  0x94   : > { %2046 = shalt.err (!%p2043_p4)
}
  0x95   : > { %s2047_s8 = scalar_lea.vmem %s266_s23, 768  ;;  %s2154_s10 = smov [#allocation9]  }
  0x96   : > { %p2048_p7 = scmp.ne.s32.totalorder %s266_s23, %s2047_s8  ;;  %s2052_s7 = sshll.u32 %s2154_s10, 4  ;;  %s2053_s7 = int_to_ptr.vmem [resolvable:$false] %s2052_s7 }
  0x97   : > { %s2054_s29 = scalar_lea.vmem %s2053_s7, 1536  ;;  %p2055_p11 = scmp.lt.s32.totalorder %s266_s23, %s2053_s7 }
  0x98   : > { %p2050_p3 = pnand %p2048_p7, %p2326_p0  ;;  %p2056_p12 = scmp.lt.s32.totalorder %s2054_s29, %s2047_s8 }
  0x9a   : > { %p2051_p5 = pneg %p2050_p3  ;;  %p2057_p9 = por %p2056_p12, %p2055_p11 }
  0x9c   : > { %p2058_p6 = pnand %p2057_p9, %p2051_p5 }
  0x9e   : > { %2061 = shalt.err (!%p2058_p6)
}
  0x9f   : > { %p3193_p10 = scmp.ne.s32.totalorder %s3185_s28, 0  ;;  %p3194_p1 = scmp.ne.s32.totalorder %s3178_s26, 0 }
  0xa1   : > { %1813 = dma.hbm_to_vmem [thread:$0]  (!%p3193_p10), %s263_s11, 768, %s266_s23, %s2320_s27  }
  0xa2   : > { %274 = sbr.rel (%p3194_p1) target bundleno = 1027 (0x403), region = 40 }
  0xa9   : > { %s2431_s6 = sand.u32 1, %s2132_s19   ;;  %p3195_p0 = scmp.ne.s32.totalorder %s3176_s24, 0 }
  0xaa   : > { %s1771_s30 = smul.u32 24, %s2431_s6  ;;  %s277_s14 = scalar_lea.sflag [#allocation5], %s2431_s6 }
  0xac   : > { %s2435_s1 = scalar_lea.vmem [#allocation4], %s1771_s30 }
  0xad   : > { %2111 = dma.done.wait (%p3195_p0), %s277_s14, 384  }
  0xae   : > { %2113 = vsyncadd (%p3195_p0), %s277_s14, 4294966912  ;;  %s285_s28 = sand.u32 1, %s2217_s22   ;;  %s2442_s27 = scalar_lea.vmem [#allocation7], %s1771_s30 }
  0xaf   : > { %s286_s26 = scalar_lea.sflag [#allocation8], %s285_s28 }
  0xb0   : > { %2115 = dma.done.wait (%p3195_p0), %s286_s26, 1152  }
  0xb1   : > { %2117 = vsyncadd (%p3195_p0), %s286_s26, 4294966144  ;;  %s1772_s23 = smul.u32 48, %s2431_s6  ;;  %p3196_p9 = scmp.eq.s32.totalorder %s2217_s22, 0 }
  0xb3   : > { %s2451_s16 = scalar_lea.vmem [#allocation9], %s1772_s23 }
  0xb4   : > { %2119 = dma.done.wait (%p3196_p9), [#allocation11], 3712   ;;  %p3197_p13 = pmov %p3196_p9 }
  0xb5   : > { %v2457_v0 = vld [vmem:[#allocation12] sm:$0xff]  ;;  %v2459_v1 = vld [vmem:[#allocation12 + $0x8] sm:$0xff]  ;;  %v2461_v2 = vld [vmem:[#allocation12 + $0x10] sm:$0xff]  ;;  %s2155_s24 = smov 127   ;;  %s2156_s11 = smov 110   ;;  %v2163_v34 = vmov 0  }
  0xb6   : > { %2121 = vsyncadd (%p3197_p13), [#allocation11], 4294963584  ;;  %v2463_v3 = vld [vmem:[#allocation12 + $0x18] sm:$0xff]  ;;  %v2465_v4 = vld [vmem:[#allocation12 + $0x20] sm:$0xff]  ;;  %s2157_s3 = smov 126   ;;  %s2158_s12 = smov 108   ;;  %757 = vmatprep.mubr.bf16.mxu0 %v2163_v34  ;;  %800 = vmatprep.mubr.bf16.mxu1 %v2163_v34 }
  0xb7   : > { %v2467_v5 = vld [vmem:[#allocation12 + $0x28] sm:$0xff]  ;;  %v2469_v6 = vld [vmem:[#allocation12 + $0x30] sm:$0xff]  ;;  %v2471_v7 = vld [vmem:[#allocation12 + $0x38] sm:$0xff]  ;;  %s2159_s17 = smov 109   ;;  %s2160_s13 = smov 91   ;;  %vm410_vm0 = vcmask 1039360  }
  0xb8   : > { %3198 = vst [vmem:[#allocation21_spill] sm:$0xff] %v2471_v7  ;;  %v2473_v8 = vld [vmem:[#allocation12 + $0x40] sm:$0xff]  ;;  %v2475_v9 = vld [vmem:[#allocation12 + $0x48] sm:$0xff]  ;;  %v2477_v10 = vld [vmem:[#allocation12 + $0x50] sm:$0xff]  ;;  %s2161_s15 = smov 92   ;;  %s2162_s20 = smov 90  }
  0xb9   : > { %3199 = vst [vmem:[#allocation22_spill] sm:$0xff] %v2473_v8  ;;  %v2479_v11 = vld [vmem:[#allocation12 + $0x58] sm:$0xff]  ;;  %v2481_v12 = vld [vmem:[#allocation12 + $0x60] sm:$0xff]  ;;  %v2483_v13 = vld [vmem:[#allocation12 + $0x68] sm:$0xff]  ;;  %vm595_vm1 = vcmask 1043456   ;;  %vm453_vm2 = vcmask 900096  }
  0xba   : > { %v2485_v14 = vld [vmem:[#allocation12 + $0x70] sm:$0xff]  ;;  %v2487_v15 = vld [vmem:[#allocation12 + $0x78] sm:$0xff]  ;;  %v2489_v16 = vld [vmem:[#allocation12 + $0x80] sm:$0xff]  ;;  %vm432_vm3 = vcmask 1031168   ;;  %vm495_vm4 = vcmask 883712   ;;  %vm474_vm5 = vcmask 891904  }
  0xbb   : > { %v2491_v17 = vld [vmem:[#allocation12 + $0x88] sm:$0xff]  ;;  %v2493_v18 = vld [vmem:[#allocation12 + $0x90] sm:$0xff]  ;;  %v2495_v19 = vld [vmem:[#allocation12 + $0x98] sm:$0xff]  ;;  %vm537_vm6 = vcmask 744448   ;;  %vm516_vm7 = vcmask 752640   ;;  %vm710_vm8 = vcmask 1044480  }
  0xbc   : > { %3200 = vst [vmem:[#allocation23_spill] sm:$0xff] %v2495_v19  ;;  %v2497_v20 = vld [vmem:[#allocation12 + $0xa0] sm:$0xff]  ;;  %v2499_v21 = vld [vmem:[#allocation12 + $0xa8] sm:$0xff]  ;;  %v2501_v22 = vld [vmem:[#allocation12 + $0xb0] sm:$0xff]  ;;  %vm558_vm9 = vcmask 736256   ;;  %vm706_vm10 = vcmask 596992  }
  0xbd   : > { %3201 = vst [vmem:[#allocation24_spill] sm:$0xff] %v2497_v20  ;;  %v2503_v23 = vld [vmem:[#allocation12 + $0xb8] sm:$0xff]  ;;  %v2505_v24 = vld [vmem:[#allocation12 + $0xc0] ss:$8 sm:$0x7]  ;;  %s3006_s8 = scalar_lea.vmem [#allocation13], %s1772_s23 }
  0xbe   : > { %3202 = vst [vmem:[#allocation25_spill] sm:$0xff] %v2505_v24  ;;  %v381_v25 = vld [vmem:[%s2435_s1 + $0x8] sm:$0xff]  ;;  %v380_v26 = vld [vmem:[%s2435_s1] sm:$0xff]  ;;  %v382_v29 = vld [vmem:[%s2435_s1 + $0x10] sm:$0xff]  ;;  %s3008_s10 = smov 0  }
  0xbf   : > { %v2509_v27 = vcombine.high %v381_v25, %v381_v25  ;;  %v2511_v28 = vcombine.high %v380_v26, %v380_v26  ;;  %v2518_v30 = vcombine.low %v382_v29, %v382_v29  ;;  %v2520_v31 = vcombine.low %v381_v25, %v381_v25  ;;  %v866_v33 = vld [vmem:[%s2442_s27] sm:$0xff]  ;;  %v2608_v37 = vld [vmem:[%s2442_s27 + $0x8] sm:$0xff] }
  0xc0   : > { %v2526_v32 = vcombine.low %v380_v26, %v380_v26  ;;  %v2603_v35 = vcombine.high %v866_v33, %v866_v33  ;;  %v2605_v36 = vcombine.high %v382_v29, %v382_v29  ;;  %v2614_v38 = vcombine.low %v866_v33, %v866_v33 }
  0xc1   : > { %404 = vrot.lane.b32.xlu1 %v2509_v27, %s2155_s24  ;;  %400 = vrot.lane.b32.xlu0 %v2511_v28, %s2155_s24  ;;  %v2618_v39 = vcombine.low %v2608_v37, %v2608_v37 }
  0xc5   : > { %406 = vrot.lane.b32.xlu1 %v2518_v30, %s2155_s24  ;;  %402 = vrot.lane.b32.xlu0 %v2520_v31, %s2155_s24 }
  0xc9   : > { %443 = vrot.lane.b32.xlu1 %v2511_v28, %s2156_s11  ;;  %398 = vrot.lane.b32.xlu0 %v2526_v32, %s2155_s24 }
  0xcd   : > { %447 = vrot.lane.b32.xlu1 %v2509_v27, %s2156_s11  ;;  %445 = vrot.lane.b32.xlu0 %v2520_v31, %s2156_s11 }
  0xd1   : > { %441 = vrot.lane.b32.xlu1 %v2526_v32, %s2156_s11  ;;  %449 = vrot.lane.b32.xlu0 %v2518_v30, %s2156_s11 }
  0xd5   : > { %424 = vrot.lane.b32.xlu1 %v2520_v31, %s2157_s3  ;;  %422 = vrot.lane.b32.xlu0 %v2511_v28, %s2157_s3 }
  0xd9   : > { %428 = vrot.lane.b32.xlu1 %v2518_v30, %s2157_s3  ;;  %426 = vrot.lane.b32.xlu0 %v2509_v27, %s2157_s3 }
  0xdd   : > { %485 = vrot.lane.b32.xlu1 %v2511_v28, %s2158_s12  ;;  %420 = vrot.lane.b32.xlu0 %v2526_v32, %s2157_s3 }
  0xe1   : > { %489 = vrot.lane.b32.xlu1 %v2509_v27, %s2158_s12  ;;  %487 = vrot.lane.b32.xlu0 %v2520_v31, %s2158_s12 }
  0xe5   : > { %483 = vrot.lane.b32.xlu1 %v2526_v32, %s2158_s12  ;;  %491 = vrot.lane.b32.xlu0 %v2518_v30, %s2158_s12 }
  0xe9   : > { %466 = vrot.lane.b32.xlu1 %v2520_v31, %s2159_s17  ;;  %464 = vrot.lane.b32.xlu0 %v2511_v28, %s2159_s17 }
  0xed   : > { %470 = vrot.lane.b32.xlu1 %v2518_v30, %s2159_s17  ;;  %468 = vrot.lane.b32.xlu0 %v2509_v27, %s2159_s17 }
  0xf1   : > { %527 = vrot.lane.b32.xlu1 %v2511_v28, %s2160_s13  ;;  %462 = vrot.lane.b32.xlu0 %v2526_v32, %s2159_s17 }
  0xf5   : > { %531 = vrot.lane.b32.xlu1 %v2509_v27, %s2160_s13  ;;  %529 = vrot.lane.b32.xlu0 %v2520_v31, %s2160_s13 }
  0xf9   : > { %525 = vrot.lane.b32.xlu1 %v2526_v32, %s2160_s13  ;;  %533 = vrot.lane.b32.xlu0 %v2518_v30, %s2160_s13 }
  0xfd   : > { %508 = vrot.lane.b32.xlu1 %v2520_v31, %s2161_s15  ;;  %506 = vrot.lane.b32.xlu0 %v2511_v28, %s2161_s15 }
 0x101   : > { %512 = vrot.lane.b32.xlu1 %v2518_v30, %s2161_s15  ;;  %510 = vrot.lane.b32.xlu0 %v2509_v27, %s2161_s15 }
 0x105   : > { %548 = vrot.lane.b32.xlu1 %v2511_v28, %s2162_s20  ;;  %504 = vrot.lane.b32.xlu0 %v2526_v32, %s2161_s15 }
 0x109   : > { %552 = vrot.lane.b32.xlu1 %v2509_v27, %s2162_s20  ;;  %550 = vrot.lane.b32.xlu0 %v2520_v31, %s2162_s20 }
 0x10d   : > { %546 = vrot.lane.b32.xlu1 %v2526_v32, %s2162_s20  ;;  %554 = vrot.lane.b32.xlu0 %v2518_v30, %s2162_s20 }
 0x111   : > { %886 = vrot.lane.b32.xlu1 %v2603_v35, %s2155_s24  ;;  %408 = vrot.lane.b32.xlu0 %v2605_v36, %s2155_s24 }
 0x115   : > { %884 = vrot.lane.b32.xlu1 %v2614_v38, %s2155_s24  ;;  %888 = vrot.lane.b32.xlu0 %v2618_v39, %s2155_s24 }
 0x119   : > { %924 = vrot.lane.b32.xlu1 %v2603_v35, %s2156_s11  ;;  %451 = vrot.lane.b32.xlu0 %v2605_v36, %s2156_s11 }
 0x11d   : > { %922 = vrot.lane.b32.xlu1 %v2614_v38, %s2156_s11  ;;  %926 = vrot.lane.b32.xlu0 %v2618_v39, %s2156_s11 }
 0x121   : > { %905 = vrot.lane.b32.xlu1 %v2603_v35, %s2157_s3  ;;  %430 = vrot.lane.b32.xlu0 %v2605_v36, %s2157_s3 }
 0x125   : > { %903 = vrot.lane.b32.xlu1 %v2614_v38, %s2157_s3  ;;  %907 = vrot.lane.b32.xlu0 %v2618_v39, %s2157_s3 }
 0x129   : > { %962 = vrot.lane.b32.xlu1 %v2603_v35, %s2158_s12  ;;  %493 = vrot.lane.b32.xlu0 %v2605_v36, %s2158_s12 }
 0x12d   : > { %960 = vrot.lane.b32.xlu1 %v2614_v38, %s2158_s12  ;;  %964 = vrot.lane.b32.xlu0 %v2618_v39, %s2158_s12 }
 0x131   : > { %943 = vrot.lane.b32.xlu1 %v2603_v35, %s2159_s17  ;;  %472 = vrot.lane.b32.xlu0 %v2605_v36, %s2159_s17 }
 0x133   : > { %v405_v40 = vpop.permute.xlu1 %404  ;;  %v401_v41 = vpop.permute.xlu0 %400 }
 0x135   : > { %941 = vrot.lane.b32.xlu1 %v2614_v38, %s2159_s17  ;;  %945 = vrot.lane.b32.xlu0 %v2618_v39, %s2159_s17 }
 0x137   : > { %v2656_v42 = vpop.permute.xlu1 %406  ;;  %v403_v43 = vpop.permute.xlu0 %402 }
 0x138   : > { %v414_v44 = vsel %vm410_vm0, %v405_v40, %v2656_v42  ;;  %v412_v45 = vsel %vm410_vm0, %v401_v41, %v403_v43  ;;  %v413_v46 = vsel %vm410_vm0, %v403_v43, %v405_v40 }
 0x139   : > { %v571_v47 = vrot.slane %v414_v44, 4  ;;  %v569_v48 = vrot.slane %v412_v45, 4  ;;  %v570_v49 = vrot.slane %v413_v46, 4  ;;  %1000 = vrot.lane.b32.xlu1 %v2603_v35, %s2160_s13  ;;  %535 = vrot.lane.b32.xlu0 %v2605_v36, %s2160_s13 }
 0x13b   : > { %v444_v50 = vpop.permute.xlu1 %443  ;;  %v399_v51 = vpop.permute.xlu0 %398  ;;  %v602_v52 = vsel %vm595_vm1, %v2511_v28, %v569_v48  ;;  %v610_v53 = vsel %vm595_vm1, %v2509_v27, %v571_v47  ;;  %v606_v54 = vsel %vm595_vm1, %v2520_v31, %v570_v49 }
 0x13c   : > { %v411_v55 = vsel %vm410_vm0, %v399_v51, %v401_v41  ;;  %725 = vmatprep.subr.bf16.mxu0 %v602_v52  ;;  %768 = vmatprep.subr.bf16.mxu1 %v610_v53 }
 0x13d   : > { %v568_v56 = vrot.slane %v411_v55, 4  ;;  %769 = vmatpush1.bf16.msra.mxu1 %v606_v54  ;;  %998 = vrot.lane.b32.xlu1 %v2614_v38, %s2160_s13 }
 0x13e   : > { %1002 = vrot.lane.b32.xlu0 %v2618_v39, %s2160_s13 }
 0x13f   : > { %v448_v57 = vpop.permute.xlu1 %447  ;;  %v446_v58 = vpop.permute.xlu0 %445  ;;  %v598_v59 = vsel %vm595_vm1, %v2526_v32, %v568_v56  ;;  %v868_v32 = vld [vmem:[%s2442_s27 + $0x10] sm:$0xff] }
 0x140   : > { %726 = vmatpush1.bf16.msra.mxu0 %v598_v59  ;;  %v455_v62 = vsel %vm453_vm2, %v444_v50, %v446_v58  ;;  %v456_v27 = vsel %vm453_vm2, %v446_v58, %v448_v57  ;;  %v2710_v49 = vcombine.low %v868_v32, %v868_v32  ;;  %v2724_v56 = vcombine.high %v868_v32, %v868_v32 }
 0x141   : > { %981 = vrot.lane.b32.xlu1 %v2603_v35, %s2161_s15  ;;  %v576_v63 = vrot.slane %v455_v62, 4  ;;  %v577_v33 = vrot.slane %v456_v27, 4 }
 0x142   : > { %514 = vrot.lane.b32.xlu0 %v2605_v36, %s2161_s15 }
 0x143   : > { %v442_v60 = vpop.permute.xlu1 %441  ;;  %v2683_v61 = vpop.permute.xlu0 %449 }
 0x144   : > { %v457_v28 = vsel %vm453_vm2, %v448_v57, %v2683_v61  ;;  %v454_v44 = vsel %vm453_vm2, %v442_v60, %v444_v50  ;;  %v2716_v50 = vcombine.high %v2608_v37, %v2608_v37 }
 0x145   : > { %979 = vrot.lane.b32.xlu1 %v2614_v38, %s2161_s15  ;;  %v578_v40 = vrot.slane %v457_v28, 4  ;;  %v575_v51 = vrot.slane %v454_v44, 4 }
 0x146   : > { %983 = vrot.lane.b32.xlu0 %v2618_v39, %s2161_s15 }
 0x147   : > { %v425_v25 = vpop.permute.xlu1 %424  ;;  %v423_v26 = vpop.permute.xlu0 %422 }
 0x148   : > { %v434_v29 = vsel %vm432_vm3, %v423_v26, %v425_v25 }
 0x149   : > { %1019 = vrot.lane.b32.xlu1 %v2603_v35, %s2162_s20  ;;  %v626_v31 = vsel %vm595_vm1, %v434_v29, %v576_v63 }
 0x14a   : > { %556 = vrot.lane.b32.xlu0 %v2605_v36, %s2162_s20  ;;  %727 = vmatprep.subr.bf16.mxu0 %v626_v31 }
 0x14b   : > { %v2700_v41 = vpop.permute.xlu1 %428  ;;  %v427_v43 = vpop.permute.xlu0 %426 }
 0x14c   : > { %v435_v45 = vsel %vm432_vm3, %v425_v25, %v427_v43  ;;  %v436_v46 = vsel %vm432_vm3, %v427_v43, %v2700_v41 }
 0x14d   : > { %1017 = vrot.lane.b32.xlu1 %v2614_v38, %s2162_s20  ;;  %v634_v47 = vsel %vm595_vm1, %v436_v46, %v578_v40  ;;  %v630_v48 = vsel %vm595_vm1, %v435_v45, %v577_v33 }
 0x14e   : > { %1021 = vrot.lane.b32.xlu0 %v2618_v39, %s2162_s20  ;;  %770 = vmatprep.subr.bf16.mxu1 %v634_v47 }
 0x14f   : > { %v486_v52 = vpop.permute.xlu1 %485  ;;  %771 = vmatpush1.bf16.msra.mxu1 %v630_v48  ;;  %v421_v53 = vpop.permute.xlu0 %420 }
 0x150   : > { %v433_v54 = vsel %vm432_vm3, %v421_v53, %v423_v26 }
 0x151   : > { %892 = vrot.lane.b32.xlu1 %v2710_v49, %s2155_s24  ;;  %v622_v55 = vsel %vm595_vm1, %v433_v54, %v575_v51 }
 0x152   : > { %890 = vrot.lane.b32.xlu0 %v2716_v50, %s2155_s24  ;;  %728 = vmatpush1.bf16.msra.mxu0 %v622_v55 }
 0x153   : > { %v490_v57 = vpop.permute.xlu1 %489  ;;  %v488_v37 = vpop.permute.xlu0 %487 }
 0x154   : > { %v497_v60 = vsel %vm495_vm4, %v486_v52, %v488_v37  ;;  %v498_v26 = vsel %vm495_vm4, %v488_v37, %v490_v57 }
 0x155   : > { %928 = vrot.lane.b32.xlu1 %v2716_v50, %s2156_s11  ;;  %v583_v62 = vrot.slane %v497_v60, 4  ;;  %v584_v31 = vrot.slane %v498_v26, 4 }
 0x156   : > { %894 = vrot.lane.b32.xlu0 %v2724_v56, %s2155_s24 }
 0x157   : > { %v484_v58 = vpop.permute.xlu1 %483  ;;  %v2730_v59 = vpop.permute.xlu0 %491 }
 0x158   : > { %v499_v27 = vsel %vm495_vm4, %v490_v57, %v2730_v59  ;;  %v496_v43 = vsel %vm495_vm4, %v484_v58, %v486_v52 }
 0x159   : > { %932 = vrot.lane.b32.xlu1 %v2724_v56, %s2156_s11  ;;  %v585_v32 = vrot.slane %v499_v27, 4  ;;  %v582_v48 = vrot.slane %v496_v43, 4 }
 0x15a   : > { %930 = vrot.lane.b32.xlu0 %v2710_v49, %s2156_s11 }
 0x15b   : > { %v467_v63 = vpop.permute.xlu1 %466  ;;  %v465_v25 = vpop.permute.xlu0 %464 }
 0x15c   : > { %v476_v28 = vsel %vm474_vm5, %v465_v25, %v467_v63 }
 0x15d   : > { %911 = vrot.lane.b32.xlu1 %v2710_v49, %s2157_s3  ;;  %v649_v29 = vsel %vm595_vm1, %v476_v28, %v583_v62 }
 0x15e   : > { %909 = vrot.lane.b32.xlu0 %v2716_v50, %s2157_s3  ;;  %729 = vmatprep.subr.bf16.mxu0 %v649_v29 }
 0x15f   : > { %v2746_v33 = vpop.permute.xlu1 %470  ;;  %v469_v40 = vpop.permute.xlu0 %468 }
 0x160   : > { %v477_v44 = vsel %vm474_vm5, %v467_v63, %v469_v40  ;;  %v478_v45 = vsel %vm474_vm5, %v469_v40, %v2746_v33 }
 0x161   : > { %966 = vrot.lane.b32.xlu1 %v2716_v50, %s2158_s12  ;;  %v657_v46 = vsel %vm595_vm1, %v478_v45, %v585_v32  ;;  %v653_v47 = vsel %vm595_vm1, %v477_v44, %v584_v31 }
 0x162   : > { %913 = vrot.lane.b32.xlu0 %v2724_v56, %s2157_s3  ;;  %772 = vmatprep.subr.bf16.mxu1 %v657_v46 }
 0x163   : > { %v528_v51 = vpop.permute.xlu1 %527  ;;  %773 = vmatpush1.bf16.msra.mxu1 %v653_v47  ;;  %v463_v52 = vpop.permute.xlu0 %462 }
 0x164   : > { %v475_v53 = vsel %vm474_vm5, %v463_v52, %v465_v25 }
 0x165   : > { %970 = vrot.lane.b32.xlu1 %v2724_v56, %s2158_s12  ;;  %v645_v54 = vsel %vm595_vm1, %v475_v53, %v582_v48 }
 0x166   : > { %968 = vrot.lane.b32.xlu0 %v2710_v49, %s2158_s12  ;;  %730 = vmatpush1.bf16.msra.mxu0 %v645_v54 }
 0x167   : > { %v532_v55 = vpop.permute.xlu1 %531  ;;  %v530_v57 = vpop.permute.xlu0 %529 }
 0x168   : > { %v539_v60 = vsel %vm537_vm6, %v528_v51, %v530_v57  ;;  %v540_v26 = vsel %vm537_vm6, %v530_v57, %v532_v55 }
 0x169   : > { %949 = vrot.lane.b32.xlu1 %v2710_v49, %s2159_s17  ;;  %v590_v62 = vrot.slane %v539_v60, 4  ;;  %v591_v31 = vrot.slane %v540_v26, 4 }
 0x16a   : > { %947 = vrot.lane.b32.xlu0 %v2716_v50, %s2159_s17 }
 0x16b   : > { %v526_v37 = vpop.permute.xlu1 %525  ;;  %v2768_v58 = vpop.permute.xlu0 %533 }
 0x16c   : > { %v541_v27 = vsel %vm537_vm6, %v532_v55, %v2768_v58  ;;  %v538_v44 = vsel %vm537_vm6, %v526_v37, %v528_v51  ;;  %v2164_v55 = vmov 65535  }
 0x16d   : > { %1004 = vrot.lane.b32.xlu1 %v2716_v50, %s2160_s13  ;;  %v592_v32 = vrot.slane %v541_v27, 4  ;;  %v589_v52 = vrot.slane %v538_v44, 4  ;;  %v711_v57 = vsel %vm595_vm1, 4294967295, %v2164_v55  ;;  %v2824_v55 = vld [vmem:[#allocation10] sm:$0xff]  }
 0x16e   : > { %951 = vrot.lane.b32.xlu0 %v2724_v56, %s2159_s17 }
 0x16f   : > { %v509_v63 = vpop.permute.xlu1 %508  ;;  %v507_v25 = vpop.permute.xlu0 %506 }
 0x170   : > { %v518_v28 = vsel %vm516_vm7, %v507_v25, %v509_v63 }
 0x171   : > { %1008 = vrot.lane.b32.xlu1 %v2724_v56, %s2160_s13  ;;  %v672_v29 = vsel %vm595_vm1, %v518_v28, %v590_v62  ;;  %v2803_v62 = vsel %vm710_vm8, %v711_v57, 0 }
 0x172   : > { %1006 = vrot.lane.b32.xlu0 %v2710_v49, %s2160_s13  ;;  %731 = vmatprep.subr.bf16.mxu0 %v672_v29 }
 0x173   : > { %v2784_v40 = vpop.permute.xlu1 %512  ;;  %v511_v43 = vpop.permute.xlu0 %510 }
 0x174   : > { %v519_v45 = vsel %vm516_vm7, %v509_v63, %v511_v43  ;;  %v520_v46 = vsel %vm516_vm7, %v511_v43, %v2784_v40 }
 0x175   : > { %987 = vrot.lane.b32.xlu1 %v2710_v49, %s2161_s15  ;;  %v680_v47 = vsel %vm595_vm1, %v520_v46, %v592_v32  ;;  %v676_v48 = vsel %vm595_vm1, %v519_v45, %v591_v31 }
 0x176   : > { %985 = vrot.lane.b32.xlu0 %v2716_v50, %s2161_s15  ;;  %774 = vmatprep.subr.bf16.mxu1 %v680_v47 }
 0x177   : > { %v549_v53 = vpop.permute.xlu1 %548  ;;  %775 = vmatpush1.bf16.msra.mxu1 %v676_v48  ;;  %v505_v51 = vpop.permute.xlu0 %504 }
 0x178   : > { %v517_v54 = vsel %vm516_vm7, %v505_v51, %v507_v25 }
 0x179   : > { %1023 = vrot.lane.b32.xlu1 %v2716_v50, %s2162_s20  ;;  %v668_v37 = vsel %vm595_vm1, %v517_v54, %v589_v52 }
 0x17a   : > { %989 = vrot.lane.b32.xlu0 %v2724_v56, %s2161_s15  ;;  %732 = vmatpush1.bf16.msra.mxu0 %v668_v37 }
 0x17b   : > { %v553_v60 = vpop.permute.xlu1 %552  ;;  %v551_v63 = vpop.permute.xlu0 %550 }
 0x17c   : > { %v560_v25 = vsel %vm558_vm9, %v549_v53, %v551_v63  ;;  %v561_v26 = vsel %vm558_vm9, %v551_v63, %v553_v60 }
 0x17d   : > { %v693_v27 = vsel %vm595_vm1, %v560_v25, 1065369472  ;;  %1027 = vrot.lane.b32.xlu1 %v2724_v56, %s2162_s20  ;;  %v695_v32 = vsel %vm595_vm1, %v561_v26, 1065369472 }
 0x17e   : > { %v715_v28 = vand.u32 %v2803_v62, %v693_v27  ;;  %1025 = vrot.lane.b32.xlu0 %v2710_v49, %s2162_s20  ;;  %v717_v52 = vand.u32 %v2803_v62, %v695_v32 }
 0x17f   : > { %v547_v29 = vpop.permute.xlu1 %546  ;;  %v2813_v31 = vpop.permute.xlu0 %554 }
 0x180   : > { %v559_v43 = vsel %vm558_vm9, %v547_v29, %v549_v53  ;;  %v562_v44 = vsel %vm558_vm9, %v553_v60, %v2813_v31  ;;  %733 = vmatprep.subr.bf16.mxu0 %v715_v28 }
 0x181   : > { %v691_v45 = vsel %vm595_vm1, %v559_v43, 1065369472  ;;  %v697_v46 = vsel %vm595_vm1, %v562_v44, 1065369472 }
 0x182   : > { %v713_v47 = vand.u32 %v2803_v62, %v691_v45  ;;  %v719_v48 = vand.u32 %v2803_v62, %v697_v46 }
 0x183   : > { %v887_v51 = vpop.permute.xlu1 %886  ;;  %v409_v54 = vpop.permute.xlu0 %408 }
 0x184   : > { %v415_v53 = vsel %vm410_vm0, %v2656_v42, %v409_v54  ;;  %v419_v57 = vsel %vm410_vm0, %v409_v54, 0  ;;  %734 = vmatpush1.bf16.msra.mxu0 %v713_v47  ;;  %776 = vmatprep.subr.bf16.mxu1 %v719_v48 }
 0x185   : > { %v572_v37 = vrot.slane %v415_v53, 4  ;;  %v573_v60 = vrot.slane %v419_v57, 4  ;;  %777 = vmatpush1.bf16.msra.mxu1 %v717_v52 }
 0x187   : > { %v885_v63 = vpop.permute.xlu1 %884  ;;  %v2829_v25 = vpop.permute.xlu0 %888  ;;  %v618_v26 = vsel %vm595_vm1, %v2605_v36, %v573_v60  ;;  %1741 = vmatmul.mubr.msk.bf16.vlgmr.msra.gmra.mrb[0].mxu0 %vm706_vm10, %v2824_v55  ;;  %v614_v42 = vsel %vm595_vm1, %v2518_v30, %v572_v37 }
 0x188   : > { %v896_v27 = vsel %vm410_vm0, %v885_v63, %v887_v51  ;;  %v897_v28 = vsel %vm410_vm0, %v887_v51, %v2829_v25  ;;  %811 = vmatprep.subr.bf16.mxu0 %v618_v26  ;;  %1742 = vmatmul.mubr.msk.bf16.vlgmr.msra.gmra.mrb[0].mxu1 %vm706_vm10, %v2824_v55 }
 0x189   : > { %v1037_v29 = vrot.slane %v896_v27, 4  ;;  %v1038_v32 = vrot.slane %v897_v28, 4  ;;  %812 = vmatpush1.bf16.msra.mxu0 %v614_v42  ;;  %843 = vmatprep.mubr.bf16.mxu0 %v2163_v34 }
 0x18a   : > { %1220 = vmatprep.mubr.bf16.mxu1 %v2163_v34 }
 0x18b   : > { %v925_v36 = vpop.permute.xlu1 %924  ;;  %v452_v43 = vpop.permute.xlu0 %451  ;;  %v1070_v30 = vsel %vm595_vm1, %v2603_v35, %v1038_v32  ;;  %v1066_v44 = vsel %vm595_vm1, %v2614_v38, %v1037_v29 }
 0x18c   : > { %1188 = vmatprep.subr.bf16.mxu1 %v1070_v30  ;;  %v458_v47 = vsel %vm453_vm2, %v2683_v61, %v452_v43  ;;  %v461_v48 = vsel %vm453_vm2, %v452_v43, 0 }
 0x18d   : > { %1189 = vmatpush1.bf16.msra.mxu1 %v1066_v44  ;;  %v579_v52 = vrot.slane %v458_v47, 4  ;;  %v580_v51 = vrot.slane %v461_v48, 4 }
 0x18f   : > { %v923_v45 = vpop.permute.xlu1 %922  ;;  %v2848_v46 = vpop.permute.xlu0 %926 }
 0x190   : > { %v934_v57 = vsel %vm453_vm2, %v923_v45, %v925_v36  ;;  %v935_v35 = vsel %vm453_vm2, %v925_v36, %v2848_v46 }
 0x191   : > { %v1044_v63 = vrot.slane %v934_v57, 4  ;;  %v1045_v26 = vrot.slane %v935_v35, 4 }
 0x193   : > { %v906_v54 = vpop.permute.xlu1 %905  ;;  %v431_v53 = vpop.permute.xlu0 %430 }
 0x194   : > { %v437_v38 = vsel %vm432_vm3, %v2700_v41, %v431_v53  ;;  %v440_v37 = vsel %vm432_vm3, %v431_v53, 0 }
 0x195   : > { %v641_v60 = vsel %vm595_vm1, %v440_v37, %v580_v51  ;;  %v638_v61 = vsel %vm595_vm1, %v437_v38, %v579_v52 }
 0x196   : > { %813 = vmatprep.subr.bf16.mxu0 %v641_v60 }
 0x197   : > { %v904_v42 = vpop.permute.xlu1 %903  ;;  %v2861_v27 = vpop.permute.xlu0 %907  ;;  %814 = vmatpush1.bf16.msra.mxu0 %v638_v61 }
 0x198   : > { %v915_v28 = vsel %vm432_vm3, %v904_v42, %v906_v54  ;;  %v916_v29 = vsel %vm432_vm3, %v906_v54, %v2861_v27 }
 0x199   : > { %v1094_v41 = vsel %vm595_vm1, %v916_v29, %v1045_v26  ;;  %v1090_v32 = vsel %vm595_vm1, %v915_v28, %v1044_v63 }
 0x19a   : > { %1190 = vmatprep.subr.bf16.mxu1 %v1094_v41 }
 0x19b   : > { %v963_v36 = vpop.permute.xlu1 %962  ;;  %v494_v43 = vpop.permute.xlu0 %493  ;;  %1191 = vmatpush1.bf16.msra.mxu1 %v1090_v32 }
 0x19c   : > { %v500_v45 = vsel %vm495_vm4, %v2730_v59, %v494_v43  ;;  %v503_v47 = vsel %vm495_vm4, %v494_v43, 0 }
 0x19d   : > { %v586_v48 = vrot.slane %v500_v45, 4  ;;  %v587_v52 = vrot.slane %v503_v47, 4 }
 0x19f   : > { %v961_v30 = vpop.permute.xlu1 %960  ;;  %v2868_v44 = vpop.permute.xlu0 %964 }
 0x1a0   : > { %v972_v53 = vsel %vm495_vm4, %v961_v30, %v963_v36  ;;  %v973_v57 = vsel %vm495_vm4, %v963_v36, %v2868_v44 }
 0x1a1   : > { %v1051_v60 = vrot.slane %v972_v53, 4  ;;  %v1052_v61 = vrot.slane %v973_v57, 4 }
 0x1a3   : > { %v944_v51 = vpop.permute.xlu1 %943  ;;  %v473_v54 = vpop.permute.xlu0 %472 }
 0x1a4   : > { %v479_v35 = vsel %vm474_vm5, %v2746_v33, %v473_v54  ;;  %v482_v38 = vsel %vm474_vm5, %v473_v54, 0 }
 0x1a5   : > { %v664_v37 = vsel %vm595_vm1, %v482_v38, %v587_v52  ;;  %v661_v59 = vsel %vm595_vm1, %v479_v35, %v586_v48 }
 0x1a6   : > { %815 = vmatprep.subr.bf16.mxu0 %v664_v37 }
 0x1a7   : > { %v942_v63 = vpop.permute.xlu1 %941  ;;  %v2881_v26 = vpop.permute.xlu0 %945  ;;  %816 = vmatpush1.bf16.msra.mxu0 %v661_v59 }
 0x1a8   : > { %v953_v42 = vsel %vm474_vm5, %v942_v63, %v944_v51  ;;  %v954_v28 = vsel %vm474_vm5, %v944_v51, %v2881_v26 }
 0x1a9   : > { %v1117_v33 = vsel %vm595_vm1, %v954_v28, %v1052_v61  ;;  %v1113_v29 = vsel %vm595_vm1, %v953_v42, %v1051_v60 }
 0x1aa   : > { %1192 = vmatprep.subr.bf16.mxu1 %v1117_v33 }
 0x1ab   : > { %v1001_v41 = vpop.permute.xlu1 %1000  ;;  %v536_v32 = vpop.permute.xlu0 %535  ;;  %1193 = vmatpush1.bf16.msra.mxu1 %v1113_v29 }
 0x1ac   : > { %v542_v30 = vsel %vm537_vm6, %v2768_v58, %v536_v32  ;;  %v545_v45 = vsel %vm537_vm6, %v536_v32, 0 }
 0x1ad   : > { %v593_v48 = vrot.slane %v542_v30, 4  ;;  %v594_v52 = vrot.slane %v545_v45, 4 }
 0x1af   : > { %v999_v36 = vpop.permute.xlu1 %998 }
 0x1b0   : > { %v2888_v43 = vpop.permute.xlu0 %1002  ;;  %v1010_v51 = vsel %vm537_vm6, %v999_v36, %v1001_v41 }
 0x1b1   : > { %v1011_v53 = vsel %vm537_vm6, %v1001_v41, %v2888_v43  ;;  %v1058_v37 = vrot.slane %v1010_v51, 4 }
 0x1b2   : > { %v1059_v60 = vrot.slane %v1011_v53, 4 }
 0x1b3   : > { %v982_v47 = vpop.permute.xlu1 %981 }
 0x1b4   : > { %v515_v54 = vpop.permute.xlu0 %514 }
 0x1b5   : > { %v521_v57 = vsel %vm516_vm7, %v2784_v40, %v515_v54  ;;  %v524_v35 = vsel %vm516_vm7, %v515_v54, 0 }
 0x1b6   : > { %v687_v38 = vsel %vm595_vm1, %v524_v35, %v594_v52  ;;  %v684_v58 = vsel %vm595_vm1, %v521_v57, %v593_v48 }
 0x1b7   : > { %817 = vmatprep.subr.bf16.mxu0 %v687_v38  ;;  %v980_v59 = vpop.permute.xlu1 %979 }
 0x1b8   : > { %v991_v61 = vsel %vm516_vm7, %v980_v59, %v982_v47  ;;  %v2902_v63 = vpop.permute.xlu0 %983  ;;  %818 = vmatpush1.bf16.msra.mxu0 %v684_v58 }
 0x1b9   : > { %v992_v42 = vsel %vm516_vm7, %v982_v47, %v2902_v63  ;;  %v1136_v40 = vsel %vm595_vm1, %v991_v61, %v1058_v37 }
 0x1ba   : > { %v1140_v28 = vsel %vm595_vm1, %v992_v42, %v1059_v60  ;;  %v2929_v60 = vld [vmem:[#allocation10 + $0x8] sm:$0xff]  }
 0x1bb   : > { %1194 = vmatprep.subr.bf16.mxu1 %v1140_v28  ;;  %v1020_v33 = vpop.permute.xlu1 %1019 }
 0x1bc   : > { %v557_v29 = vpop.permute.xlu0 %556  ;;  %1195 = vmatpush1.bf16.msra.mxu1 %v1136_v40 }
 0x1bd   : > { %v563_v41 = vsel %vm558_vm9, %v2813_v31, %v557_v29  ;;  %v566_v32 = vsel %vm558_vm9, %v557_v29, 0 }
 0x1be   : > { %v699_v36 = vsel %vm595_vm1, %v563_v41, 1065369472  ;;  %v700_v30 = vsel %vm595_vm1, %v566_v32, 1065369472 }
 0x1bf   : > { %v721_v45 = vand.u32 %v2803_v62, %v699_v36  ;;  %v723_v47 = vand.u32 %v2803_v62, %v700_v30  ;;  %v1018_v48 = vpop.permute.xlu1 %1017 }
 0x1c0   : > { %v1029_v52 = vsel %vm558_vm9, %v1018_v48, %v1020_v33  ;;  %v2916_v51 = vpop.permute.xlu0 %1021 }
 0x1c1   : > { %v1158_v54 = vsel %vm595_vm1, %v1029_v52, 1065369472  ;;  %v1030_v31 = vsel %vm558_vm9, %v1020_v33, %v2916_v51  ;;  %819 = vmatprep.subr.bf16.mxu0 %v723_v47 }
 0x1c2   : > { %v1176_v53 = vand.u32 %v1158_v54, %v2803_v62  ;;  %v1160_v57 = vsel %vm595_vm1, %v1030_v31, 1065369472  ;;  %820 = vmatpush1.bf16.msra.mxu0 %v721_v45 }
 0x1c3   : > { %v1178_v35 = vand.u32 %v1160_v57, %v2803_v62  ;;  %v893_v38 = vpop.permute.xlu1 %892 }
 0x1c4   : > { %v891_v58 = vpop.permute.xlu0 %890 }
 0x1c5   : > { %v898_v37 = vsel %vm410_vm0, %v2829_v25, %v891_v58  ;;  %v899_v59 = vsel %vm410_vm0, %v891_v58, %v893_v38  ;;  %1196 = vmatprep.subr.bf16.mxu1 %v1178_v35  ;;  %1743 = vmatmul.mubr.msk.bf16.vlgmr.msra.gmra.mrb[4].mxu0 %vm706_vm10, %v2824_v55 }
 0x1c6   : > { %v1039_v61 = vrot.slane %v898_v37, 4  ;;  %v1040_v42 = vrot.slane %v899_v59, 4  ;;  %1197 = vmatpush1.bf16.msra.mxu1 %v1176_v53  ;;  %1263 = vmatprep.mubr.bf16.mxu0 %v2163_v34 }
 0x1c7   : > { %v929_v40 = vpop.permute.xlu1 %928 }
 0x1c8   : > { %v895_v28 = vpop.permute.xlu0 %894  ;;  %v1078_v33 = vsel %vm595_vm1, %v2716_v50, %v1040_v42  ;;  %v1074_v25 = vsel %vm595_vm1, %v2618_v39, %v1039_v61  ;;  %v936_v45 = vsel %vm453_vm2, %v2848_v46, %v929_v40 }
 0x1c9   : > { %v900_v29 = vsel %vm410_vm0, %v893_v38, %v895_v28  ;;  %v902_v41 = vsel %vm410_vm0, %v895_v28, 0  ;;  %1231 = vmatprep.subr.bf16.mxu0 %v1078_v33  ;;  %1751 = vmatmul.mubr.msk.bf16.vlgmr.msra.gmra.mrb[4].mxu1 %vm706_vm10, %v2929_v60  ;;  %v1046_v52 = vrot.slane %v936_v45, 4 }
 0x1ca   : > { %v1041_v55 = vrot.slane %v900_v29, 4  ;;  %v1042_v32 = vrot.slane %v902_v41, 4  ;;  %1232 = vmatpush1.bf16.msra.mxu0 %v1074_v25  ;;  %1306 = vmatprep.mubr.bf16.mxu1 %v2163_v34 }
 0x1cb   : > { %v933_v36 = vpop.permute.xlu1 %932 }
 0x1cc   : > { %v931_v30 = vpop.permute.xlu0 %930  ;;  %v1086_v50 = vsel %vm595_vm1, %v2724_v56, %v1042_v32  ;;  %v1082_v39 = vsel %vm595_vm1, %v2710_v49, %v1041_v55  ;;  %v940_v34 = vsel %vm453_vm2, %v933_v36, 0 }
 0x1cd   : > { %v937_v47 = vsel %vm453_vm2, %v929_v40, %v931_v30  ;;  %1274 = vmatprep.subr.bf16.mxu1 %v1086_v50  ;;  %v938_v53 = vsel %vm453_vm2, %v931_v30, %v933_v36  ;;  %v1049_v38 = vrot.slane %v940_v34, 4 }
 0x1ce   : > { %1275 = vmatpush1.bf16.msra.mxu1 %v1082_v39  ;;  %v1047_v54 = vrot.slane %v937_v47, 4  ;;  %v1048_v58 = vrot.slane %v938_v53, 4 }
 0x1cf   : > { %v912_v48 = vpop.permute.xlu1 %911 }
 0x1d0   : > { %v910_v31 = vpop.permute.xlu0 %909 }
 0x1d1   : > { %v917_v56 = vsel %vm432_vm3, %v2861_v27, %v910_v31  ;;  %v918_v49 = vsel %vm432_vm3, %v910_v31, %v912_v48 }
 0x1d2   : > { %v1102_v57 = vsel %vm595_vm1, %v918_v49, %v1047_v54  ;;  %v1098_v46 = vsel %vm595_vm1, %v917_v56, %v1046_v52 }
 0x1d3   : > { %1233 = vmatprep.subr.bf16.mxu0 %v1102_v57  ;;  %v967_v35 = vpop.permute.xlu1 %966 }
 0x1d4   : > { %v914_v37 = vpop.permute.xlu0 %913  ;;  %1234 = vmatpush1.bf16.msra.mxu0 %v1098_v46  ;;  %v974_v33 = vsel %vm495_vm4, %v2868_v44, %v967_v35 }
 0x1d5   : > { %v919_v59 = vsel %vm432_vm3, %v912_v48, %v914_v37  ;;  %v921_v61 = vsel %vm432_vm3, %v914_v37, 0  ;;  %v1053_v41 = vrot.slane %v974_v33, 4 }
 0x1d6   : > { %v1109_v42 = vsel %vm595_vm1, %v921_v61, %v1049_v38  ;;  %v1106_v27 = vsel %vm595_vm1, %v919_v59, %v1048_v58 }
 0x1d7   : > { %1276 = vmatprep.subr.bf16.mxu1 %v1109_v42  ;;  %v971_v40 = vpop.permute.xlu1 %970 }
 0x1d8   : > { %v969_v28 = vpop.permute.xlu0 %968  ;;  %1277 = vmatpush1.bf16.msra.mxu1 %v1106_v27  ;;  %v978_v36 = vsel %vm495_vm4, %v971_v40, 0 }
 0x1d9   : > { %v975_v25 = vsel %vm495_vm4, %v967_v35, %v969_v28  ;;  %v976_v30 = vsel %vm495_vm4, %v969_v28, %v971_v40  ;;  %v1056_v48 = vrot.slane %v978_v36, 4 }
 0x1da   : > { %v1054_v55 = vrot.slane %v975_v25, 4  ;;  %v1055_v52 = vrot.slane %v976_v30, 4 }
 0x1db   : > { %v950_v29 = vpop.permute.xlu1 %949 }
 0x1dc   : > { %v948_v32 = vpop.permute.xlu0 %947 }
 0x1dd   : > { %v955_v50 = vsel %vm474_vm5, %v2881_v26, %v948_v32  ;;  %v956_v39 = vsel %vm474_vm5, %v948_v32, %v950_v29 }
 0x1de   : > { %v1125_v45 = vsel %vm595_vm1, %v956_v39, %v1054_v55  ;;  %v1121_v47 = vsel %vm595_vm1, %v955_v50, %v1053_v41 }
 0x1df   : > { %1235 = vmatprep.subr.bf16.mxu0 %v1125_v45  ;;  %v1005_v44 = vpop.permute.xlu1 %1004 }
 0x1e0   : > { %v952_v54 = vpop.permute.xlu0 %951  ;;  %1236 = vmatpush1.bf16.msra.mxu0 %v1121_v47  ;;  %v1012_v57 = vsel %vm537_vm6, %v2888_v43, %v1005_v44 }
 0x1e1   : > { %v957_v31 = vsel %vm474_vm5, %v950_v29, %v952_v54  ;;  %v959_v34 = vsel %vm474_vm5, %v952_v54, 0  ;;  %v1060_v38 = vrot.slane %v1012_v57, 4 }
 0x1e2   : > { %v1132_v53 = vsel %vm595_vm1, %v959_v34, %v1056_v48  ;;  %v1129_v26 = vsel %vm595_vm1, %v957_v31, %v1055_v52 }
 0x1e3   : > { %1278 = vmatprep.subr.bf16.mxu1 %v1132_v53  ;;  %v1009_v56 = vpop.permute.xlu1 %1008 }
 0x1e4   : > { %v1007_v49 = vpop.permute.xlu0 %1006  ;;  %1279 = vmatpush1.bf16.msra.mxu1 %v1129_v26  ;;  %v1016_v59 = vsel %vm537_vm6, %v1009_v56, 0 }
 0x1e5   : > { %v1013_v46 = vsel %vm537_vm6, %v1005_v44, %v1007_v49  ;;  %v1014_v61 = vsel %vm537_vm6, %v1007_v49, %v1009_v56  ;;  %v1063_v33 = vrot.slane %v1016_v59, 4 }
 0x1e6   : > { %v1061_v58 = vrot.slane %v1013_v46, 4  ;;  %v1062_v25 = vrot.slane %v1014_v61, 4 }
 0x1e7   : > { %v988_v35 = vpop.permute.xlu1 %987 }
 0x1e8   : > { %v986_v37 = vpop.permute.xlu0 %985 }
 0x1e9   : > { %v993_v42 = vsel %vm516_vm7, %v2902_v63, %v986_v37  ;;  %v994_v27 = vsel %vm516_vm7, %v986_v37, %v988_v35 }
 0x1ea   : > { %v1148_v40 = vsel %vm595_vm1, %v994_v27, %v1061_v58  ;;  %v1144_v28 = vsel %vm595_vm1, %v993_v42, %v1060_v38 }
 0x1eb   : > { %1237 = vmatprep.subr.bf16.mxu0 %v1148_v40  ;;  %v1024_v43 = vpop.permute.xlu1 %1023 }
 0x1ec   : > { %v990_v29 = vpop.permute.xlu0 %989  ;;  %1238 = vmatpush1.bf16.msra.mxu0 %v1144_v28  ;;  %v1031_v32 = vsel %vm558_vm9, %v2916_v51, %v1024_v43 }
 0x1ed   : > { %v995_v41 = vsel %vm516_vm7, %v988_v35, %v990_v29  ;;  %v997_v55 = vsel %vm516_vm7, %v990_v29, 0  ;;  %v1162_v45 = vsel %vm595_vm1, %v1031_v32, 1065369472 }
 0x1ee   : > { %v1155_v63 = vsel %vm595_vm1, %v997_v55, %v1063_v33  ;;  %v1152_v36 = vsel %vm595_vm1, %v995_v41, %v1062_v25  ;;  %v1180_v53 = vand.u32 %v1162_v45, %v2803_v62 }
 0x1ef   : > { %1280 = vmatprep.subr.bf16.mxu1 %v1155_v63  ;;  %v1028_v30 = vpop.permute.xlu1 %1027 }
 0x1f0   : > { %v1035_v50 = vsel %vm558_vm9, %v1028_v30, 0  ;;  %v1026_v39 = vpop.permute.xlu0 %1025  ;;  %1281 = vmatpush1.bf16.msra.mxu1 %v1152_v36 }
 0x1f1   : > { %v1167_v47 = vsel %vm595_vm1, %v1035_v50, 1065369472  ;;  %v1032_v44 = vsel %vm558_vm9, %v1024_v43, %v1026_v39  ;;  %v1033_v48 = vsel %vm558_vm9, %v1026_v39, %v1028_v30 }
 0x1f2   : > { %v1186_v51 = vand.u32 %v1167_v47, %v2803_v62  ;;  %v1164_v52 = vsel %vm595_vm1, %v1032_v44, 1065369472  ;;  %v1166_v54 = vsel %vm595_vm1, %v1033_v48, 1065369472 }
 0x1f3   : > { %v1182_v31 = vand.u32 %v1164_v52, %v2803_v62  ;;  %v1184_v34 = vand.u32 %v1166_v54, %v2803_v62 }
 0x1f4   : > { %1282 = vmatprep.subr.bf16.mxu1 %v1186_v51 }
 0x1f5   : > { %1239 = vmatprep.subr.bf16.mxu0 %v1182_v31  ;;  %1283 = vmatpush1.bf16.msra.mxu1 %v1184_v34 }
 0x1f6   : > { %1240 = vmatpush1.bf16.msra.mxu0 %v1180_v53 }
 0x1f8   : > { %1753 = vmatmul.mubr.msk.bf16.vlgmr.msra.gmra.mrb[8].mxu1 %vm706_vm10, %v2929_v60 }
 0x1f9   : > { %1752 = vmatmul.mubr.msk.bf16.vlgmr.msra.gmra.mrb[8].mxu0 %vm706_vm10, %v2929_v60 }
 0x25a   : > { %v759_v26 = vpop.f32.mrb[0].mxu0 }
 0x25b   : > { %854 = vst [vmem:[#allocation2] sm:$0xff] %v759_v26  ;;  %v802_v56 = vpop.f32.mrb[0].mxu1  ;;  %v761_v49 = vpop.f32.mrb[1].mxu0 }
 0x25c   : > { %856 = vst [vmem:[#allocation2 + $0x10] sm:$0xff] %v802_v56  ;;  %855 = vst [vmem:[#allocation2 + $0x8] sm:$0xff] %v761_v49  ;;  %v804_v57 = vpop.f32.mrb[1].mxu1  ;;  %v763_v46 = vpop.f32.mrb[2].mxu0 }
 0x25d   : > { %857 = vst [vmem:[#allocation2 + $0x18] sm:$0xff] %v804_v57  ;;  %860 = vst [vmem:[#allocation2 + $0x30] sm:$0xff] %v763_v46  ;;  %v806_v62 = vpop.f32.mrb[2].mxu1  ;;  %v765_v35 = vpop.f32.mrb[3].mxu0 }
 0x25e   : > { %862 = vst [vmem:[#allocation2 + $0x40] sm:$0xff] %v806_v62  ;;  %861 = vst [vmem:[#allocation2 + $0x38] sm:$0xff] %v765_v35  ;;  %v808_v38 = vpop.f32.mrb[3].mxu1 }
 0x25f   : > { %863 = vst [vmem:[#allocation2 + $0x48] sm:$0xff] %v808_v38 }
 0x298   : > { %v845_v58 = vpop.f32.mrb[4].mxu0 }
 0x299   : > { %858 = vst [vmem:[#allocation2 + $0x20] sm:$0xff] %v845_v58  ;;  %v847_v37 = vpop.f32.mrb[5].mxu0 }
 0x29a   : > { %859 = vst [vmem:[#allocation2 + $0x28] sm:$0xff] %v847_v37  ;;  %v849_v60 = vpop.f32.mrb[6].mxu0 }
 0x29b   : > { %864 = vst [vmem:[#allocation2 + $0x50] sm:$0xff] %v849_v60  ;;  %v851_v59 = vpop.f32.mrb[7].mxu0 }
 0x29c   : > { %v1222_v61 = vpop.f32.mrb[4].mxu1  ;;  %865 = vst [vmem:[#allocation2 + $0x58] sm:$0xff] %v851_v59 }
 0x29d   : > { %1317 = vst [vmem:[#allocation3] sm:$0xff] %v1222_v61  ;;  %v1224_v42 = vpop.f32.mrb[5].mxu1 }
 0x29e   : > { %1318 = vst [vmem:[#allocation3 + $0x8] sm:$0xff] %v1224_v42  ;;  %v1226_v27 = vpop.f32.mrb[6].mxu1 }
 0x29f   : > { %1323 = vst [vmem:[#allocation3 + $0x30] sm:$0xff] %v1226_v27  ;;  %v1228_v40 = vpop.f32.mrb[7].mxu1 }
 0x2a0   : > { %1324 = vst [vmem:[#allocation3 + $0x38] sm:$0xff] %v1228_v40 }
 0x2cb   : > { %v1308_v28 = vpop.f32.mrb[8].mxu1 }
 0x2cc   : > { %v1265_v43 = vpop.f32.mrb[8].mxu0  ;;  %1321 = vst [vmem:[#allocation3 + $0x20] sm:$0xff] %v1308_v28  ;;  %v1310_v33 = vpop.f32.mrb[9].mxu1 }
 0x2cd   : > { %1319 = vst [vmem:[#allocation3 + $0x10] sm:$0xff] %v1265_v43  ;;  %v1267_v25 = vpop.f32.mrb[9].mxu0  ;;  %1322 = vst [vmem:[#allocation3 + $0x28] sm:$0xff] %v1310_v33  ;;  %v1312_v29 = vpop.f32.mrb[10].mxu1 }
 0x2ce   : > { %1320 = vst [vmem:[#allocation3 + $0x18] sm:$0xff] %v1267_v25  ;;  %v1269_v41 = vpop.f32.mrb[10].mxu0  ;;  %1327 = vst [vmem:[#allocation3 + $0x50] sm:$0xff] %v1312_v29  ;;  %v1314_v55 = vpop.f32.mrb[11].mxu1 }
 0x2cf   : > { %1325 = vst [vmem:[#allocation3 + $0x40] sm:$0xff] %v1269_v41  ;;  %v1271_v32 = vpop.f32.mrb[11].mxu0  ;;  %1328 = vst [vmem:[#allocation3 + $0x58] sm:$0xff] %v1314_v55 }
 0x2d0   : > { %1326 = vst [vmem:[#allocation3 + $0x48] sm:$0xff] %v1271_v32 }
 0x2d1 LB: >> { %v3203_v24 = vld [vmem:[#allocation25_spill] sm:$0xff]  ;;  %v1347_v63 = vlaneseq  ;;  %s1335_s7 = smul.u32 384, %s2144_s10  ;;  %s1334_s10 = sadd.s32 1, %s2144_s10   ;;  %s2144_s10 = sphi %s3008_s10, %s1334_s10  }
 0x2d2   : >> { %p1331_p2 = scmp.ge.s32.totalorder %s1334_s10, 2  }
 0x2d3   : >> { %v1348_v36 = vshrl.u32 %v1347_v63, 7  ;;  %s1336_s29 = sshra.s32 %s1335_s7, 7  ;;  %s1767_s3 = smul.u32 (%p1331_p2), 768, %s2217_s22 }
 0x2d4   : >> { %s3014_s30 = sshll.u32 %s1336_s29, 3  ;;  %s1578_s12 = sshll.u32 (%p1331_p2), %s3006_s8, 4  ;;  %s1579_s12 = int_to_ptr.vmem [resolvable:$true] %s1578_s12 }
 0x2d5   : >> { %v1349_v30 = vsub.s32 0, %v1348_v36  ;;  %v1353_v50 = vsub.s32 1, %v1348_v36  ;;  %v1357_v39 = vsub.s32 2, %v1348_v36  ;;  %s1435_s14 = scalar_lea.vmem [#allocation3], %s3014_s30  ;;  %s1339_s1 = scalar_lea.vmem [#allocation2], %s3014_s30 }
 0x2d6   : >> { %v3037_v46 = vld [vmem:[%s1339_s1] sm:$0xff]  ;;  %v3039_v62 = vld [vmem:[%s1339_s1 + $0x8] sm:$0xff]  ;;  %v3041_v35 = vld [vmem:[%s1339_s1 + $0x10] sm:$0xff]  ;;  %s1542_s24 = scalar_lea.vmem %s2451_s16, %s3014_s30 [#allocation9]  ;;  %s1559_s11 = scalar_lea.vmem %s3006_s8, %s3014_s30 [#allocation13] }
 0x2d7   : >> { %v1350_v45 = vrot.slane %v3203_v24, %v1349_v30  ;;  %v1354_v47 = vrot.slane %v3203_v24, %v1353_v50  ;;  %v1358_v44 = vrot.slane %v3203_v24, %v1357_v39  ;;  %v3020_v48 = vld [vmem:[%s1435_s14] sm:$0xff]  ;;  %v3022_v51 = vld [vmem:[%s1435_s14 + $0x8] sm:$0xff]  ;;  %v3024_v52 = vld [vmem:[%s1435_s14 + $0x10] sm:$0xff]  ;;  %s3115_s15 = scalar_lea.hbm (%p1331_p2), %s3158_s5, %s1767_s3  ;;  %s1564_s20 = scalar_lea.sflag (%p1331_p2), [#allocation6], %s2431_s6 }
 0x2d8   : >> { %v3026_v54 = vld [vmem:[%s1435_s14 + $0x30] sm:$0xff]  ;;  %v3031_v26 = vld [vmem:[%s1435_s14 + $0x38] sm:$0xff]  ;;  %v3033_v56 = vld [vmem:[%s1435_s14 + $0x40] sm:$0xff]  ;;  %s2062_s7 = scalar_lea.vmem (%p1331_p2), %s1579_s12, 768  ;;  %p3208_p4 = scmp.ne.s32.totalorder (%p1331_p2), %s3184_s9, 0 }
 0x2d9   : >> { %v1442_v31 = vmul.f32 %v3020_v48, %v1350_v45  ;;  %v1443_v34 = vmul.f32 %v3022_v51, %v1354_v47  ;;  %v1444_v53 = vmul.f32 %v3024_v52, %v1358_v44  ;;  %v1445_v49 = vmul.f32 %v3026_v54, %v1350_v45  ;;  %v3043_v37 = vld [vmem:[%s1339_s1 + $0x30] sm:$0xff]  ;;  %v3050_v43 = vld [vmem:[%s1339_s1 + $0x38] sm:$0xff]  ;;  %v3053_v32 = vld [vmem:[%s1339_s1 + $0x40] sm:$0xff]  ;;  %p2063_p8 = scmp.ne.s32.totalorder (%p1331_p2), %s1579_s12, %s2062_s7  ;;  %s2165_s10 = smov (%p1331_p2), [#allocation13]  }
 0x2da   : >> { %v1362_v60 = vmul.f32 %v1350_v45, %v3037_v46  ;;  %v1363_v59 = vmul.f32 %v1354_v47, %v3039_v62  ;;  %v1364_v61 = vmul.f32 %v1358_v44, %v3041_v35  ;;  %v1446_v27 = vmul.f32 %v3031_v26, %v1354_v47  ;;  %s2066_s29 = sshll.u32 (%p1331_p2), %s2165_s10, 4  ;;  %s2067_s29 = int_to_ptr.vmem [resolvable:$false] %s2066_s29 }
 0x2db   : >> { %v1448_v57 = vadd.f32 %v1443_v34, %v1442_v31  ;;  %v1463_v38 = vmul.f32 %v1442_v31, %v1442_v31  ;;  %v1464_v58 = vmul.f32 %v1443_v34, %v1443_v34  ;;  %v1465_v42 = vmul.f32 %v1444_v53, %v1444_v53  ;;  %p2064_p7 = pnand (%p1331_p2), %p2063_p8, %p3208_p4  ;;  %s2068_s16 = scalar_lea.vmem (%p1331_p2), %s2067_s29, 1536 }
 0x2dc   : >> { %v1447_v40 = vmul.f32 %v3033_v56, %v1358_v44  ;;  %v1365_v33 = vmul.f32 %v1350_v45, %v3043_v37  ;;  %v1368_v25 = vadd.f32 %v1363_v59, %v1362_v60  ;;  %v1466_v29 = vmul.f32 %v1445_v49, %v1445_v49  ;;  %p2069_p5 = scmp.lt.s32.totalorder (%p1331_p2), %s1579_s12, %s2067_s29  ;;  %p2070_p11 = scmp.lt.s32.totalorder (%p1331_p2), %s2068_s16, %s2062_s7 }
 0x2dd   : >> { %v1449_v28 = vadd.f32 %v1448_v57, %v1444_v53  ;;  %v1469_v41 = vadd.f32 %v1464_v58, %v1463_v38  ;;  %v1383_v63 = vmul.f32 %v1362_v60, %v1362_v60  ;;  %v1384_v36 = vmul.f32 %v1363_v59, %v1363_v59  ;;  %p2065_p3 = pneg (%p1331_p2), %p2064_p7 }
 0x2de   : >> { %v1385_v30 = vmul.f32 %v1364_v61, %v1364_v61  ;;  %v1366_v50 = vmul.f32 %v1354_v47, %v3050_v43  ;;  %v1369_v39 = vadd.f32 %v1368_v25, %v1364_v61  ;;  %v1467_v31 = vmul.f32 %v1446_v27, %v1446_v27  ;;  %p2071_p12 = por (%p1331_p2), %p2070_p11, %p2069_p5 }
 0x2df   : >> { %v1450_v55 = vadd.f32 %v1449_v28, %v1445_v49  ;;  %v1470_v34 = vadd.f32 %v1469_v41, %v1465_v42  ;;  %v1386_v53 = vmul.f32 %v1365_v33, %v1365_v33  ;;  %v1389_v57 = vadd.f32 %v1384_v36, %v1383_v63 }
 0x2e0   : >> { %v1367_v8 = vmul.f32 %v1358_v44, %v3053_v32  ;;  %v1370_v45 = vadd.f32 %v1369_v39, %v1365_v33  ;;  %v1468_v7 = vmul.f32 %v1447_v40, %v1447_v40  ;;  %v1387_v49 = vmul.f32 %v1366_v50, %v1366_v50  ;;  %p2072_p6 = pnand (%p1331_p2), %p2071_p12, %p2065_p3 }
 0x2e1   : >> { %v1451_v24 = vadd.f32 %v1450_v55, %v1446_v27  ;;  %v1471_v20 = vadd.f32 %v1470_v34, %v1466_v29  ;;  %v1390_v58 = vadd.f32 %v1389_v57, %v1385_v30 }
 0x2e2   : >> { %v1371_v28 = vadd.f32 %v1370_v45, %v1366_v50  ;;  %v1388_v59 = vmul.f32 %v1367_v8, %v1367_v8 }
 0x2e3   : >> { %v1452_v38 = vadd.f32 %v1451_v24, %v1447_v40  ;;  %v1472_v60 = vadd.f32 %v1471_v20, %v1467_v31  ;;  %v1391_v19 = vadd.f32 %v1390_v58, %v1386_v53 }
 0x2e4   : >> { %v1372_v47 = vadd.f32 %v1371_v28, %v1367_v8 }
 0x2e5   : >> { %1453 = vadd.xlane.f32.xlu1 %v1452_v38  ;;  %v1473_v61 = vadd.f32 %v1472_v60, %v1468_v7  ;;  %v1392_v25 = vadd.f32 %v1391_v19, %v1387_v49 }
 0x2e6   : >> { %1373 = vadd.xlane.f32.xlu0 %v1372_v47 }
 0x2e7   : >> { %v1393_v42 = vadd.f32 %v1392_v25, %v1388_v59 }
 0x2e9   : >> { %1474 = vadd.xlane.f32.xlu1 %v1473_v61 }
 0x2ea   : >> { %1394 = vadd.xlane.f32.xlu0 %v1393_v42 }
 0x372   : >> { %v1454_v27 = vpop.xlane.xlu1 %1453 }
 0x373   : >> { %v1455_v44 = vrot.slane %v1454_v27, 4  ;;  %v1374_v41 = vpop.xlane.xlu0 %1373 }
 0x374   : >> { %v1375_v29 = vrot.slane %v1374_v41, 4 }
 0x375   : >> { %v1456_v33 = vadd.f32 %v1455_v44, %v1454_v27 }
 0x376   : >> { %v1475_v24 = vpop.xlane.xlu1 %1474  ;;  %v1376_v55 = vadd.f32 %v1375_v29, %v1374_v41 }
 0x377   : >> { %v1476_v40 = vrot.slane %v1475_v24, 4  ;;  %v1457_v63 = vrot.slane %v1456_v33, 2  ;;  %v1395_v36 = vpop.xlane.xlu0 %1394 }
 0x378   : >> { %v1377_v30 = vrot.slane %v1376_v55, 2  ;;  %v1396_v50 = vrot.slane %v1395_v36, 4 }
 0x379   : >> { %v1477_v20 = vadd.f32 %v1476_v40, %v1475_v24  ;;  %v1458_v31 = vadd.f32 %v1457_v63, %v1456_v33 }
 0x37a   : >> { %v1397_v7 = vadd.f32 %v1396_v50, %v1395_v36  ;;  %v1378_v19 = vadd.f32 %v1377_v30, %v1376_v55 }
 0x37b   : >> { %v1478_v8 = vrot.slane %v1477_v20, 2  ;;  %v1459_v49 = vrot.slane %v1458_v31, 1 }
 0x37c   : >> { %v1398_v34 = vrot.slane %v1397_v7, 2  ;;  %v1379_v53 = vrot.slane %v1378_v19, 1 }
 0x37d   : >> { %v1479_v39 = vadd.f32 %v1478_v8, %v1477_v20  ;;  %v1460_v59 = vadd.f32 %v1459_v49, %v1458_v31 }
 0x37e   : >> { %v1399_v57 = vadd.f32 %v1398_v34, %v1397_v7  ;;  %v1380_v45 = vadd.f32 %v1379_v53, %v1378_v19 }
 0x37f   : >> { %v1480_v38 = vrot.slane %v1479_v39, 1 }
 0x380   : >> { %1773 = vpush %v1380_v45  ;;  %v1400_v58 = vrot.slane %v1399_v57, 1 }
 0x381   : >> { %v1481_v60 = vadd.f32 %v1480_v38, %v1479_v39 }
 0x382   : >> { %v1401_v28 = vadd.f32 %v1400_v58, %v1399_v57 }
 0x384   : >> { %1775 = vpush %v1401_v28 }
 0x385   : >> { %1777 = vpush %v1460_v59 }
 0x386   : >> { %1779 = vpush %v1481_v60 }
 0x3b1   : >> { %s1774_s28 = spop %1773 }
 0x3b2   : >> { %v1382_v47 = vstv %s1774_s28 }
 0x3b3   : >> { %v3057_v61 = vmul.f32 0.00024414063, %v1382_v47 }
 0x3b5   : >> { %s1776_s26 = spop %1775  ;;  %v1406_v27 = vmul.f32 %v3057_v61, %v3057_v61  ;;  %v1413_v30 = vsub.f32 %v3043_v37, %v3057_v61  ;;  %v1414_v50 = vsub.f32 %v3050_v43, %v3057_v61  ;;  %v1415_v8 = vsub.f32 %v3053_v32, %v3057_v61 }
 0x3b6   : >> { %v1403_v25 = vstv %s1776_s26  ;;  %s1778_s27 = spop %1777 }
 0x3b7   : >> { %v1405_v42 = vmul.f32 0.00024414063, %v1403_v25  ;;  %v1462_v44 = vstv %s1778_s27  ;;  %s1780_s23 = spop %1779 }
 0x3b8   : >> { %v1484_v33 = vmul.f32 0.00024414063, %v1462_v44  ;;  %v1483_v41 = vstv %s1780_s23 }
 0x3b9   : >> { %v1407_v29 = vsub.f32 %v1405_v42, %v1406_v27  ;;  %v1485_v40 = vmul.f32 0.00024414063, %v1483_v41  ;;  %v1410_v27 = vsub.f32 %v3037_v46, %v3057_v61  ;;  %v1412_v46 = vsub.f32 %v3041_v35, %v3057_v61  ;;  %v3204_v35 = vld [vmem:[#allocation23_spill] sm:$0xff] }
 0x3ba   : >> { %v1486_v55 = vmul.f32 %v1484_v33, %v1484_v33  ;;  %v1493_v34 = vsub.f32 %v3026_v54, %v1484_v33  ;;  %v1494_v53 = vsub.f32 %v3031_v26, %v1484_v33  ;;  %v1495_v57 = vsub.f32 %v3033_v56, %v1484_v33 }
 0x3bb   : >> { %v1408_v24 = vadd.f32 1e-05, %v1407_v29  ;;  %v1490_v56 = vsub.f32 %v3020_v48, %v1484_v33 }
 0x3bc   : >> { %v1487_v63 = vsub.f32 %v1485_v40, %v1486_v55  ;;  %v1491_v40 = vsub.f32 %v3022_v51, %v1484_v33 }
 0x3bd   : >> { %1894 = vrsqrt.f32 %v1408_v24 }
 0x3be   : >> { %v1488_v20 = vadd.f32 1e-05, %v1487_v63 }
 0x3c0   : >> { %1896 = vrsqrt.f32 %v1488_v20 }
 0x3c7   : >> { %v1895_v36 = vpop.eup %1894 }
 0x3c8   : >> { %v1419_v7 = vmul.f32 %v1895_v36, %v1413_v30  ;;  %v1420_v19 = vmul.f32 %v1895_v36, %v1414_v50  ;;  %v1421_v39 = vmul.f32 %v1895_v36, %v1415_v8  ;;  %v1416_v55 = vmul.f32 %v1895_v36, %v1410_v27  ;;  %v1543_v27 = vld [vmem:[%s1542_s24] sm:$0xff] }
 0x3c9   : >> { %v1492_v30 = vsub.f32 %v3024_v52, %v1484_v33  ;;  %v1411_v50 = vsub.f32 %v3039_v62, %v3057_v61 }
 0x3ca   : >> { %v1897_v31 = vpop.eup %1896  ;;  %v1425_v45 = vmul.f32 %v1419_v7, %v2463_v3  ;;  %v1426_v37 = vmul.f32 %v1420_v19, %v2465_v4  ;;  %v1427_v38 = vmul.f32 %v1421_v39, %v2467_v5  ;;  %v1422_v51 = vmul.f32 %v1416_v55, %v2457_v0 }
 0x3cb   : >> { %v1499_v43 = vmul.f32 %v1897_v31, %v1493_v34  ;;  %v1500_v49 = vmul.f32 %v1897_v31, %v1494_v53  ;;  %v1501_v58 = vmul.f32 %v1897_v31, %v1495_v57  ;;  %v1496_v44 = vmul.f32 %v1897_v31, %v1490_v56 }
 0x3cc   : >> { %v1431_v54 = vadd.f32 %v1425_v45, %v2475_v9  ;;  %v1432_v26 = vadd.f32 %v1426_v37, %v2477_v10  ;;  %v1433_v59 = vadd.f32 %v1427_v38, %v2479_v11  ;;  %v1497_v8 = vmul.f32 %v1897_v31, %v1491_v40  ;;  %v3205_v37 = vld [vmem:[#allocation24_spill] sm:$0xff]  ;;  %v1545_v40 = vld [vmem:[%s1542_s24 + $0x10] sm:$0xff] }
 0x3cd   : >> { %v1505_v32 = vmul.f32 %v1499_v43, %v2487_v15  ;;  %v1506_v28 = vmul.f32 %v1500_v49, %v2489_v16  ;;  %v1507_v60 = vmul.f32 %v1501_v58, %v2491_v17  ;;  %v1502_v7 = vmul.f32 %v1496_v44, %v2481_v12  ;;  %v3206_v49 = vld [vmem:[#allocation21_spill] sm:$0xff] }
 0x3ce   : >> { %v1498_v19 = vmul.f32 %v1897_v31, %v1492_v30  ;;  %v1417_v39 = vmul.f32 %v1895_v36, %v1411_v50  ;;  %v1418_v34 = vmul.f32 %v1895_v36, %v1412_v46  ;;  %v1503_v53 = vmul.f32 %v1497_v8, %v2483_v13 }
 0x3cf   : >> { %v1511_v47 = vadd.f32 %v1505_v32, %v2499_v21  ;;  %v1512_v25 = vadd.f32 %v1506_v28, %v2501_v22  ;;  %v1513_v42 = vadd.f32 %v1507_v60, %v2503_v23  ;;  %v1508_v52 = vadd.f32 %v1502_v7, %v2493_v18  ;;  %v3207_v32 = vld [vmem:[#allocation22_spill] sm:$0xff] }
 0x3d0   : >> { %v1504_v62 = vmul.f32 %v1498_v19, %v2485_v14  ;;  %v1423_v33 = vmul.f32 %v1417_v39, %v2459_v1  ;;  %v1428_v57 = vadd.f32 %v1422_v51, %v2469_v6  ;;  %v1424_v45 = vmul.f32 %v1418_v34, %v2461_v2 }
 0x3d1   : >> { %v1520_v41 = vadd.f32 %v1511_v47, %v1431_v54  ;;  %v1521_v29 = vadd.f32 %v1512_v25, %v1432_v26  ;;  %v1522_v24 = vadd.f32 %v1513_v42, %v1433_v59  ;;  %v1509_v61 = vadd.f32 %v1503_v53, %v3204_v35 }
 0x3d2   : >> { %v1514_v31 = vadd.f32 %v1508_v52, %v1428_v57  ;;  %v1510_v38 = vadd.f32 %v1504_v62, %v3205_v37  ;;  %v1429_v36 = vadd.f32 %v1423_v33, %v3206_v49  ;;  %v1430_v28 = vadd.f32 %v1424_v45, %v3207_v32 }
 0x3d3   : >> { %v1756_v63 = vmul.f32 -1.442695, %v1520_v41  ;;  %v1757_v48 = vmul.f32 -1.442695, %v1521_v29  ;;  %v1758_v20 = vmul.f32 -1.442695, %v1522_v24 }
 0x3d4   : >> { %v1515_v26 = vadd.f32 %v1509_v61, %v1429_v36  ;;  %v1516_v59 = vadd.f32 %v1510_v38, %v1430_v28  ;;  %v1544_v41 = vld [vmem:[%s1542_s24 + $0x8] sm:$0xff] }
 0x3d5   : >> { %1898 = vpow2.f32 %v1756_v63 }
 0x3d6   : >> { %1900 = vpow2.f32 %v1757_v48 }
 0x3d7   : >> { %1902 = vpow2.f32 %v1758_v20 }
 0x3d8   : >> { %1904 = vtanh.f32 %v1514_v31 }
 0x3df   : >> { %v1899_v43 = vpop.eup %1898 }
 0x3e0   : >> { %v1901_v58 = vpop.eup %1900  ;;  %v1532_v60 = vadd.f32 1.0, %v1899_v43 }
 0x3e1   : >> { %v1903_v54 = vpop.eup %1902  ;;  %v1533_v56 = vadd.f32 1.0, %v1901_v58 }
 0x3e2   : >> { %v1534_v47 = vadd.f32 1.0, %v1903_v54  ;;  %1906 = vrcp.f32 %v1532_v60  ;;  %v1905_v25 = vpop.eup %1904 }
 0x3e3   : >> { %1908 = vrcp.f32 %v1533_v56 }
 0x3e4   : >> { %1910 = vrcp.f32 %v1534_v47 }
 0x3e5   : >> { %1912 = vtanh.f32 %v1515_v26 }
 0x3e6   : >> { %1914 = vtanh.f32 %v1516_v59 }
 0x3ec   : >> { %v1907_v42 = vpop.eup %1906 }
 0x3ed   : >> { %v1909_v44 = vpop.eup %1908  ;;  %v1549_v29 = vsub.f32 1.0, %v1907_v42  ;;  %v1546_v48 = vmul.f32 %v1907_v42, %v1905_v25 }
 0x3ee   : >> { %v1911_v24 = vpop.eup %1910  ;;  %v1550_v55 = vsub.f32 1.0, %v1909_v44 }
 0x3ef   : >> { %v1913_v63 = vpop.eup %1912  ;;  %v1551_v20 = vsub.f32 1.0, %v1911_v24  ;;  %v1552_v30 = vmul.f32 %v1549_v29, %v1543_v27  ;;  %1333 = sbr.rel (!%p1331_p2) target bundleno = 721 (0x2d1), region = 130 }
 0x3f0   : >> { %v1915_v50 = vpop.eup %1914  ;;  %v1547_v8 = vmul.f32 %v1913_v63, %v1909_v44  ;;  %v1553_v7 = vmul.f32 %v1550_v55, %v1544_v41 }
 0x3f1   : >> { %v1548_v46 = vmul.f32 %v1915_v50, %v1911_v24  ;;  %v1554_v19 = vmul.f32 %v1551_v20, %v1545_v40  ;;  %v1555_v39 = vadd.f32 %v1552_v30, %v1546_v48 }
 0x3f2   : >> { %v1556_v51 = vadd.f32 %v1553_v7, %v1547_v8 }
 0x3f3   : >> { %v1557_v34 = vadd.f32 %v1554_v19, %v1548_v46  ;;  %1560 = vst [vmem:[%s1559_s11] sm:$0xff] %v1555_v39 }
 0x3f4   : >> { %1561 = vst [vmem:[%s1559_s11 + $0x8] sm:$0xff] %v1556_v51 }
 0x3f5   : >> { %1562 = vst [vmem:[%s1559_s11 + $0x10] sm:$0xff] %v1557_v34 }
 0x3f6   : > { %2075 = shalt.err (!%p2072_p6)
}
 0x3f7   : > { %s2076_s22 = scalar_lea.hbm %s3115_s15, 768  ;;  %s2080_s30 = scalar_lea.hbm %s3158_s5, 1536 }
 0x3f8   : > { %p2077_p10 = scmp.ne.s32.totalorder %s3115_s15, %s2076_s22  ;;  %p2081_p9 = scmp.lt.u32.totalorder %s3115_s15, %s3158_s5 }
 0x3f9   : > { %p2082_p13 = scmp.lt.u32.totalorder %s2080_s30, %s2076_s22  ;;  %p2084_p8 = scmp.lt.u32.totalorder %s2076_s22, %s3115_s15 }
 0x3fa   : > { %p2078_p1 = pnand %p2077_p10, %p3208_p4 }
 0x3fb   : > { %p2083_p2 = por %p2082_p13, %p2081_p9 }
 0x3fc   : > { %p2079_p0 = pneg %p2078_p1 }
 0x3fd   : > { %p2085_p7 = por %p2084_p8, %p2083_p2 }
 0x3ff   : > { %p2086_p3 = pnand %p2085_p7, %p2079_p0 }
 0x401   : > { %2089 = shalt.err (!%p2086_p3)
}
 0x402   : > { %1795 = dma.vmem_to_hbm [thread:$0]  (%p3208_p4), %s1579_s12, 768, %s3115_s15, %s1564_s20  }
 0x403 PF: > { %s1590_s28 = sand.u32 1, %s2128_s18   ;;  %p3209_p5 = scmp.ne.s32.totalorder %s3177_s25, 0 }
 0x404   : > { %p3210_p11 = scmp.ge.s32.totalorder %s2140_s21, 2  ;;  %s1591_s26 = scalar_lea.sflag [#allocation6], %s1590_s28 }
 0x406   : > { %p1815_p12 = pnand %p3210_p11, %p3209_p5 }
 0x408   : > { %2123 = dma.done.wait (!%p1815_p12), %s1591_s26, 768  }
 0x409   : > { %2125 = vsyncadd (!%p1815_p12), %s1591_s26, 4294966528  ;;  %s3211_s21 = sld [smem:[#allocation19_spill]]  ;;  %s3212_s27 = sld [smem:[#allocation18_spill]] }
 0x40a   : > { %s3213_s20 = sld [smem:[#allocation20_spill]]  ;;  %s3214_s18 = smov %s2132_s19 }
 0x40f   : > { %p22_p6 = scmp.ge.s32.totalorder %s3211_s21, 4   ;;  %s3215_s19 = smov %s3212_s27 }
 0x411   :  { %24 = sbr.rel (!%p22_p6) target bundleno = 11 (0xb), region = 141 }
 0x418   :  { %1596 = vsyncpa [#allocation5], 1 }
 0x419   :  { %1598 = vsyncpa [#allocation5 + $0x1], 1 }
 0x41a   :  { %1599 = vsyncpa [#allocation8], 1 }
 0x41b   :  { %1601 = vsyncpa [#allocation8 + $0x1], 1 }
 0x41c   :  { %1602 = vsyncpa [#allocation11], 1 }
 0x41d   :  { %1603 = vsyncpa [#allocation6], 1 }
 0x41e   :  { %1605 = vsyncpa [#allocation6 + $0x1], 1 }

</bundles_post_ra>
